<compile_context>
chip_gen: v7x
topology: tpu7x:2x2x1
jax: 0.10.0
libtpu: 0.0.40
codegen_flags: <defaults>
</compile_context>

<pallas_src>
import functools

import jax
import jax.numpy as jnp
from jax.experimental import pallas as pl
from jax.experimental.pallas import tpu as pltpu


def _round_up(x, m):
    return (x + m - 1) // m * m


def gru_recurrence_kernel(gi_ref, whh_ref, bhn_ref, wo_ref, bo_ref,
                          out_ref, h_scr, *, tc, seq_len, needs_mask):
    """Grid = (row_tiles, time_chunks).

    One invocation advances one row tile's GRU hidden state through `tc` time
    steps; the last time chunk also emits the output projection.  The
    time-parallel input projection arrives precomputed as the lane-dense gi
    stream (last dim 3*H_pad), so the only per-step matmul is h @ W_hh.
    """
    c = pl.program_id(1)
    last = pl.num_programs(1) - 1
    TR, H = h_scr.shape                       # H is the padded hidden dim (x128)

    @pl.when(c == 0)
    def _init():
        h_scr[...] = jnp.zeros_like(h_scr)

    # Hoist loop-invariant reads.  Bias rows stay (1, H): the broadcasting add
    # is cheap; materializing (TR, ...) copies is pure VMEM/vreg pressure.
    w_hh = whh_ref[...]                       # (H, 3H) bf16  (MXU operand)
    b_hn = bhn_ref[...]                       # (1, H)  f32

    def step(t, h):
        gi_t = gi_ref[t].astype(jnp.float32)  # (TR, 3H) folded input projection
        gh = jnp.dot(h.astype(jnp.bfloat16), w_hh,
                     preferred_element_type=jnp.float32)
        # PyTorch gate order (r, z, n); b_hn stays inside the r gate.
        r = jax.nn.sigmoid(gi_t[:, :H] + gh[:, :H])
        z = jax.nn.sigmoid(gi_t[:, H:2 * H] + gh[:, H:2 * H])
        n = jnp.tanh(gi_t[:, 2 * H:] + r * (gh[:, 2 * H:] + b_hn))
        h_new = (1.0 - z) * n + z * h
        if needs_mask:                        # static: only when T % tc != 0
            h_new = jnp.where(c * tc + t < seq_len, h_new, h)
        return h_new

    h_final = jax.lax.fori_loop(0, tc, step, h_scr[...], unroll=min(8, tc))
    h_scr[...] = h_final

    @pl.when(c == last)
    def _emit():
        out_ref[...] = (jnp.dot(h_final.astype(jnp.bfloat16), wo_ref[...],
                                preferred_element_type=jnp.float32)
                        + bo_ref[...])


@functools.partial(jax.jit, static_argnames=("horizon", "output_dim"))
def st_predictor_forward(X, adj, params, *, horizon, output_dim):
    """X: [B, T, N, F] -> [B, horizon, N, output_dim]."""
    B, T, N, Fin = X.shape
    H = params["w_hh"].shape[0]
    H_pad = _round_up(H, 128)
    Dout = horizon * output_dim
    Dout_pad = _round_up(Dout, 128)
    NB = N * B

    # ---- Phase 1: time-parallel projection, hoisted out of the recurrence ---
    # One large batched matmul over all T steps (f32, handled by XLA).
    # TODO(synk): could also be a first "parallel" Pallas phase over T chunks.
    b_ih, b_hh = params["b_ih"], params["b_hh"]
    b_fold = jnp.concatenate(
        [b_ih[:, :H] + b_hh[:, :H],
         b_ih[:, H:2 * H] + b_hh[:, H:2 * H],
         b_ih[:, 2 * H:]], axis=1)                                  # (1, 3H)
    xg = jnp.einsum("ij,btjf->btif", adj, X.astype(jnp.float32))    # (B,T,N,F)
    gc = jnp.maximum(xg @ params["w_g"] + params["b_g"], 0.0)       # (B,T,N,H)
    gi = gc @ params["w_ih"] + b_fold                               # (B,T,N,3H)
    # node-major / batch-minor rows (matches the reference reshape order)
    gi = jnp.transpose(gi, (1, 2, 0, 3)).reshape(T, NB, 3 * H)      # (T,NB,3H)

    # ---- Row / time tiling ---------------------------------------------------
    TR = 256 if NB >= 256 else _round_up(NB, 8)       # >=256 rows for v6e/v7x MXU
    NB_pad = _round_up(NB, TR)
    R = NB_pad // TR
    # Tc from a VMEM budget (~4 MiB per gi pipeline buffer), not gcd(T, 8).
    tc_budget = max(1, (4 * 1024 * 1024) // (TR * 3 * H_pad * 2))
    Tc = int(min(T, 64, tc_budget))
    C = -(-T // Tc)
    T_pad = C * Tc
    needs_mask = (T_pad != T)                 # padded steps never update h

    # per-gate column padding so the gate slices stay 128-lane aligned
    def pad_gate_cols(a):                     # (..., 3H) -> (..., 3*H_pad)
        parts = [a[..., g * H:(g + 1) * H] for g in range(3)]
        pad = [(0, 0)] * (a.ndim - 1) + [(0, H_pad - H)]
        return jnp.concatenate([jnp.pad(p, pad) for p in parts], axis=-1)

    gi_p = pad_gate_cols(gi)                                        # (T,NB,3H_pad)
    gi_p = jnp.pad(gi_p, ((0, T_pad - T), (0, NB_pad - NB), (0, 0)))
    gi_p = gi_p.astype(jnp.bfloat16)                                # lane-dense stream

    w_hh_p = pad_gate_cols(jnp.pad(params["w_hh"], ((0, H_pad - H), (0, 0))))
    w_hh_p = w_hh_p.astype(jnp.bfloat16)                            # (H_pad, 3H_pad)
    b_hn_p = jnp.pad(b_hh[:, 2 * H:], ((0, 0), (0, H_pad - H))).astype(jnp.float32)
    w_o_p = jnp.pad(params["w_o"], ((0, H_pad - H), (0, Dout_pad - Dout))
                    ).astype(jnp.bfloat16)                          # (H_pad, Dout_pad)
    b_o_p = jnp.pad(params["b_o"], ((0, 0), (0, Dout_pad - Dout))).astype(jnp.float32)

    # ---- VMEM budget: resident footprint, capped by the generation's VMEM ----
    try:
        cap = int(pltpu.get_tpu_info().vmem_capacity_bytes * 3 // 4)
    except Exception:  # pragma: no cover - fallback if info is unavailable
        cap = 48 * 1024 * 1024
    resident = (2 * Tc * TR * 3 * H_pad * 2          # gi chunk (bf16, 2 pipeline bufs)
                + 2 * H_pad * 3 * H_pad * 2          # W_hh (bf16)
                + 2 * H_pad * Dout_pad * 2           # W_o  (bf16)
                + 2 * (H_pad + Dout_pad) * 4         # bias rows (f32)
                + 2 * TR * Dout_pad * 4              # output tile (f32)
                + TR * H_pad * 4                     # h scratch (f32)
                + 8 * TR * 3 * H_pad * 4)            # gh / gate temporaries headroom
    vmem_limit = int(min(max(2 * resident, 32 * 1024 * 1024), cap))

    out = pl.pallas_call(
        functools.partial(gru_recurrence_kernel, tc=Tc, seq_len=T,
                          needs_mask=needs_mask),
        out_shape=jax.ShapeDtypeStruct((NB_pad, Dout_pad), jnp.float32),
        grid_spec=pltpu.PrefetchScalarGridSpec(
            num_scalar_prefetch=0,
            grid=(R, C),
            in_specs=[
                pl.BlockSpec((Tc, TR, 3 * H_pad), lambda r, c: (c, r, 0)),  # gi stream
                # TODO(synk): single-buffer the constant operands below via
                # pipeline_mode=pl.Buffered(1) when H is large (VMEM savings).
                pl.BlockSpec((H_pad, 3 * H_pad), lambda r, c: (0, 0)),      # W_hh
                pl.BlockSpec((1, H_pad), lambda r, c: (0, 0)),              # b_hn
                pl.BlockSpec((H_pad, Dout_pad), lambda r, c: (0, 0)),       # W_o
                pl.BlockSpec((1, Dout_pad), lambda r, c: (0, 0)),           # b_o
            ],
            out_specs=pl.BlockSpec((TR, Dout_pad), lambda r, c: (r, 0)),
            scratch_shapes=[pltpu.VMEM((TR, H_pad), jnp.float32)],
        ),
        compiler_params=pltpu.CompilerParams(
            dimension_semantics=("parallel", "arbitrary"),
            vmem_limit_bytes=vmem_limit),
    )(gi_p, w_hh_p, b_hn_p, w_o_p, b_o_p)

    # rows are node-major / batch-minor -> [B, horizon, N, output_dim]
    out = out[:NB, :Dout].reshape(N, B, horizon, output_dim)
    return jnp.transpose(out, (1, 2, 0, 3))


def reference_forward(X, adj, params, *, horizon, output_dim):
    """Pure-JAX f32 reference of the same semantics (for verification)."""
    B, T, N, Fin = X.shape
    H = params["w_hh"].shape[0]
    h = jnp.zeros((N * B, H), jnp.float32)
    for t in range(T):
        x_t = X[:, t].astype(jnp.float32)                       # (B,N,F)
        xg = jnp.einsum("ij,bjf->ibf", adj, x_t).reshape(N * B, Fin)
        gc = jnp.maximum(xg @ params["w_g"] + params["b_g"], 0.0)
        gi = gc @ params["w_ih"] + params["b_ih"]
        gh = h @ params["w_hh"] + params["b_hh"]
        r = jax.nn.sigmoid(gi[:, :H] + gh[:, :H])
        z = jax.nn.sigmoid(gi[:, H:2 * H] + gh[:, H:2 * H])
        n = jnp.tanh(gi[:, 2 * H:] + r * gh[:, 2 * H:])
        h = (1.0 - z) * n + z * h
    out = h @ params["w_o"] + params["b_o"]
    out = out.reshape(N, B, horizon, output_dim)
    return jnp.transpose(out, (1, 2, 0, 3))


def build_adjacency(edge_index, edge_weight, num_nodes):
    """Dense row-normalized adjacency with self loops from (edge_index, edge_weight)."""
    src, dst = edge_index[0], edge_index[1]
    A = jnp.zeros((num_nodes, num_nodes), jnp.float32)
    A = A.at[dst, src].add(edge_weight.astype(jnp.float32))
    A = A + jnp.eye(num_nodes, dtype=jnp.float32)               # self loops
    deg = jnp.sum(A, axis=1, keepdims=True)
    return A / jnp.maximum(deg, 1e-6)


def init_params(key, input_dim, hidden_dim, horizon, output_dim):
    ks = jax.random.split(key, 10)
    s = 0.1
    return {
        "w_g":  s * jax.random.normal(ks[0], (input_dim, hidden_dim), jnp.float32),
        "b_g":  s * jax.random.normal(ks[1], (1, hidden_dim), jnp.float32),
        "w_ih": s * jax.random.normal(ks[2], (hidden_dim, 3 * hidden_dim), jnp.float32),
        "b_ih": s * jax.random.normal(ks[3], (1, 3 * hidden_dim), jnp.float32),
        "w_hh": s * jax.random.normal(ks[4], (hidden_dim, 3 * hidden_dim), jnp.float32),
        "b_hh": s * jax.random.normal(ks[5], (1, 3 * hidden_dim), jnp.float32),
        "w_o":  s * jax.random.normal(ks[6], (hidden_dim, horizon * output_dim), jnp.float32),
        "b_o":  s * jax.random.normal(ks[7], (1, horizon * output_dim), jnp.float32),
    }


if __name__ == "__main__":
    # Small shapes consistent with the module's forward contract.
    B, T, N, Fin = 2, 8, 16, 4         # batch, seq_length, num_nodes, input_dim
    hidden_dim, horizon, output_dim = 32, 3, 1

    key = jax.random.PRNGKey(0)
    k_x, k_w, k_ew = jax.random.split(key, 3)

    X = jax.random.normal(k_x, (B, T, N, Fin), jnp.float32)

    # Deterministic ring graph: i -> (i+1) % N and reverse, with random weights.
    idx = jnp.arange(N, dtype=jnp.int32)
    src = jnp.concatenate([idx, (idx + 1) % N])
    dst = jnp.concatenate([(idx + 1) % N, idx])
    edge_index = jnp.stack([src, dst])                  # (2, 2N)
    edge_weight = jax.random.uniform(k_ew, (2 * N,), jnp.float32, 0.5, 1.5)

    adj = build_adjacency(edge_index, edge_weight, N)
    params = init_params(k_w, Fin, hidden_dim, horizon, output_dim)

    y = st_predictor_forward(X, adj, params, horizon=horizon, output_dim=output_dim)
    y = jax.block_until_ready(y)

    y_ref = reference_forward(X, adj, params, horizon=horizon, output_dim=output_dim)
    assert y.shape == (B, horizon, N, output_dim), y.shape
    # Kernel streams bf16 gi / uses bf16 MXU operands with f32 accumulation ->
    # compare against the f32 reference at bf16-level tolerance.
    assert jnp.allclose(y, y_ref, atol=2e-2, rtol=2e-2), \
        float(jnp.max(jnp.abs(y - y_ref)))

    print("KERNEL_OK")
</pallas_src>

<mosaic_0001>
module attributes {stable_mosaic.version = 11 : i64} {
  func.func @gru_recurrence_kernel(%arg0: i32, %arg1: i32, %arg2: memref<8x32x384xbf16, #tpu.memory_space<vmem>>, %arg3: memref<128x384xbf16, #tpu.memory_space<vmem>>, %arg4: memref<1x128xf32, #tpu.memory_space<vmem>>, %arg5: memref<128x128xbf16, #tpu.memory_space<vmem>>, %arg6: memref<1x128xf32, #tpu.memory_space<vmem>>, %arg7: memref<32x128xf32, #tpu.memory_space<vmem>>, %arg8: memref<32x128xf32, #tpu.memory_space<vmem>>) attributes {dimension_semantics = [#tpu.dimension_semantics<parallel>, #tpu.dimension_semantics<arbitrary>], iteration_bounds = array<i64: 1, 1>, scalar_prefetch = 0 : i64, scratch_operands = 1 : i64, tpu.core_type = #tpu.core_type<tc>, window_params = [{transform_indices = @transform_0, window_bounds = array<i64: 8, 32, 384>}, {pipeline_mode = #tpu.pipeline_mode<synchronous>, transform_indices = @transform_1, window_bounds = array<i64: 128, 384>}, {pipeline_mode = #tpu.pipeline_mode<synchronous>, transform_indices = @transform_2, window_bounds = array<i64: 1, 128>}, {pipeline_mode = #tpu.pipeline_mode<synchronous>, transform_indices = @transform_3, window_bounds = array<i64: 128, 128>}, {pipeline_mode = #tpu.pipeline_mode<synchronous>, transform_indices = @transform_4, window_bounds = array<i64: 1, 128>}, {transform_indices = @transform_5, window_bounds = array<i64: 32, 128>}]} {
    %c0_i32 = arith.constant 0 : i32
    %0 = arith.cmpi eq, %arg1, %c0_i32 : i32
    %1 = arith.extui %0 : i1 to i32
    %c0_i32_0 = arith.constant 0 : i32
    %2 = arith.cmpi ne, %1, %c0_i32_0 : i32
    scf.if %2 {
      %cst_58 = arith.constant 0.000000e+00 : f32
      %282 = vector.broadcast %cst_58 : f32 to vector<32x128xf32>
      %c0_59 = arith.constant 0 : index
      %c0_60 = arith.constant 0 : index
      %283 = vector.load %arg8[%c0_59, %c0_60] : memref<32x128xf32, #tpu.memory_space<vmem>>, vector<32x128xf32>
      tpu.vector_store %arg8[%c0_59, %c0_60], %282 {strides = array<i32>} : memref<32x128xf32, #tpu.memory_space<vmem>>, vector<32x128xf32>,
    } else {
    }
    %c0 = arith.constant 0 : index
    %c0_1 = arith.constant 0 : index
    %3 = vector.load %arg3[%c0, %c0_1] : memref<128x384xbf16, #tpu.memory_space<vmem>>, vector<128x384xbf16>
    %c0_2 = arith.constant 0 : index
    %c0_3 = arith.constant 0 : index
    %4 = vector.load %arg4[%c0_2, %c0_3] : memref<1x128xf32, #tpu.memory_space<vmem>>, vector<1x128xf32>
    %c0_4 = arith.constant 0 : index
    %c0_5 = arith.constant 0 : index
    %5 = vector.load %arg8[%c0_4, %c0_5] : memref<32x128xf32, #tpu.memory_space<vmem>>, vector<32x128xf32>
    %c0_i32_6 = arith.constant 0 : i32
    %6 = arith.index_cast %c0_i32_6 : i32 to index
    %c0_7 = arith.constant 0 : index
    %c0_8 = arith.constant 0 : index
    %7 = vector.load %arg2[%6, %c0_7, %c0_8] : memref<8x32x384xbf16, #tpu.memory_space<vmem>>, vector<1x32x384xbf16>
    %8 = vector.shape_cast %7 : vector<1x32x384xbf16> to vector<32x384xbf16>
    %9 = arith.extf %8 : vector<32x384xbf16> to vector<32x384xf32>
    %10 = arith.truncf %5 : vector<32x128xf32> to vector<32x128xbf16>
    %cst = arith.constant dense<0.000000e+00> : vector<32x384xf32>
    %11 = tpu.matmul %10, %3, %cst {dimension_numbers = #tpu.dot_dimension_numbers<[1], [0], [0], [1], [0, 0, 1, 1], [], []>} : vector<32x128xbf16>, vector<128x384xbf16>, vector<32x384xf32> -> vector<32x384xf32>
    %12 = vector.extract_strided_slice %9 {offsets = [0, 0], sizes = [32, 128], strides = [1, 1]} : vector<32x384xf32> to vector<32x128xf32>
    %13 = vector.extract_strided_slice %11 {offsets = [0, 0], sizes = [32, 128], strides = [1, 1]} : vector<32x384xf32> to vector<32x128xf32>
    %14 = arith.addf %12, %13 : vector<32x128xf32>
    %15 = arith.negf %14 : vector<32x128xf32>
    %16 = math.exp %15 : vector<32x128xf32>
    %cst_9 = arith.constant 1.000000e+00 : f32
    %17 = vector.broadcast %cst_9 : f32 to vector<32x128xf32>
    %18 = arith.addf %17, %16 : vector<32x128xf32>
    %19 = arith.divf %17, %18 : vector<32x128xf32>
    %20 = vector.extract_strided_slice %9 {offsets = [0, 128], sizes = [32, 128], strides = [1, 1]} : vector<32x384xf32> to vector<32x128xf32>
    %21 = vector.extract_strided_slice %11 {offsets = [0, 128], sizes = [32, 128], strides = [1, 1]} : vector<32x384xf32> to vector<32x128xf32>
    %22 = arith.addf %20, %21 : vector<32x128xf32>
    %23 = arith.negf %22 : vector<32x128xf32>
    %24 = math.exp %23 : vector<32x128xf32>
    %cst_10 = arith.constant 1.000000e+00 : f32
    %25 = vector.broadcast %cst_10 : f32 to vector<32x128xf32>
    %26 = arith.addf %25, %24 : vector<32x128xf32>
    %27 = arith.divf %25, %26 : vector<32x128xf32>
    %28 = vector.extract_strided_slice %9 {offsets = [0, 256], sizes = [32, 128], strides = [1, 1]} : vector<32x384xf32> to vector<32x128xf32>
    %29 = vector.extract_strided_slice %11 {offsets = [0, 256], sizes = [32, 128], strides = [1, 1]} : vector<32x384xf32> to vector<32x128xf32>
    %30 = vector.broadcast %4 : vector<1x128xf32> to vector<32x128xf32>
    %31 = arith.addf %29, %30 : vector<32x128xf32>
    %32 = arith.mulf %19, %31 : vector<32x128xf32>
    %33 = arith.addf %28, %32 : vector<32x128xf32>
    %34 = math.tanh %33 : vector<32x128xf32>
    %cst_11 = arith.constant 1.000000e+00 : f32
    %35 = vector.broadcast %cst_11 : f32 to vector<32x128xf32>
    %36 = arith.subf %35, %27 : vector<32x128xf32>
    %37 = arith.mulf %36, %34 : vector<32x128xf32>
    %38 = arith.mulf %27, %5 : vector<32x128xf32>
    %39 = arith.addf %37, %38 : vector<32x128xf32>
    %c1_i32 = arith.constant 1 : i32
    %40 = arith.index_cast %c1_i32 : i32 to index
    %c0_12 = arith.constant 0 : index
    %c0_13 = arith.constant 0 : index
    %41 = vector.load %arg2[%40, %c0_12, %c0_13] : memref<8x32x384xbf16, #tpu.memory_space<vmem>>, vector<1x32x384xbf16>
    %42 = vector.shape_cast %41 : vector<1x32x384xbf16> to vector<32x384xbf16>
    %43 = arith.extf %42 : vector<32x384xbf16> to vector<32x384xf32>
    %44 = arith.truncf %39 : vector<32x128xf32> to vector<32x128xbf16>
    %cst_14 = arith.constant dense<0.000000e+00> : vector<32x384xf32>
    %45 = tpu.matmul %44, %3, %cst_14 {dimension_numbers = #tpu.dot_dimension_numbers<[1], [0], [0], [1], [0, 0, 1, 1], [], []>} : vector<32x128xbf16>, vector<128x384xbf16>, vector<32x384xf32> -> vector<32x384xf32>
    %46 = vector.extract_strided_slice %43 {offsets = [0, 0], sizes = [32, 128], strides = [1, 1]} : vector<32x384xf32> to vector<32x128xf32>
    %47 = vector.extract_strided_slice %45 {offsets = [0, 0], sizes = [32, 128], strides = [1, 1]} : vector<32x384xf32> to vector<32x128xf32>
    %48 = arith.addf %46, %47 : vector<32x128xf32>
    %49 = arith.negf %48 : vector<32x128xf32>
    %50 = math.exp %49 : vector<32x128xf32>
    %cst_15 = arith.constant 1.000000e+00 : f32
    %51 = vector.broadcast %cst_15 : f32 to vector<32x128xf32>
    %52 = arith.addf %51, %50 : vector<32x128xf32>
    %53 = arith.divf %51, %52 : vector<32x128xf32>
    %54 = vector.extract_strided_slice %43 {offsets = [0, 128], sizes = [32, 128], strides = [1, 1]} : vector<32x384xf32> to vector<32x128xf32>
    %55 = vector.extract_strided_slice %45 {offsets = [0, 128], sizes = [32, 128], strides = [1, 1]} : vector<32x384xf32> to vector<32x128xf32>
    %56 = arith.addf %54, %55 : vector<32x128xf32>
    %57 = arith.negf %56 : vector<32x128xf32>
    %58 = math.exp %57 : vector<32x128xf32>
    %cst_16 = arith.constant 1.000000e+00 : f32
    %59 = vector.broadcast %cst_16 : f32 to vector<32x128xf32>
    %60 = arith.addf %59, %58 : vector<32x128xf32>
    %61 = arith.divf %59, %60 : vector<32x128xf32>
    %62 = vector.extract_strided_slice %43 {offsets = [0, 256], sizes = [32, 128], strides = [1, 1]} : vector<32x384xf32> to vector<32x128xf32>
    %63 = vector.extract_strided_slice %45 {offsets = [0, 256], sizes = [32, 128], strides = [1, 1]} : vector<32x384xf32> to vector<32x128xf32>
    %64 = vector.broadcast %4 : vector<1x128xf32> to vector<32x128xf32>
    %65 = arith.addf %63, %64 : vector<32x128xf32>
    %66 = arith.mulf %53, %65 : vector<32x128xf32>
    %67 = arith.addf %62, %66 : vector<32x128xf32>
    %68 = math.tanh %67 : vector<32x128xf32>
    %cst_17 = arith.constant 1.000000e+00 : f32
    %69 = vector.broadcast %cst_17 : f32 to vector<32x128xf32>
    %70 = arith.subf %69, %61 : vector<32x128xf32>
    %71 = arith.mulf %70, %68 : vector<32x128xf32>
    %72 = arith.mulf %61, %39 : vector<32x128xf32>
    %73 = arith.addf %71, %72 : vector<32x128xf32>
    %c2_i32 = arith.constant 2 : i32
    %74 = arith.index_cast %c2_i32 : i32 to index
    %c0_18 = arith.constant 0 : index
    %c0_19 = arith.constant 0 : index
    %75 = vector.load %arg2[%74, %c0_18, %c0_19] : memref<8x32x384xbf16, #tpu.memory_space<vmem>>, vector<1x32x384xbf16>
    %76 = vector.shape_cast %75 : vector<1x32x384xbf16> to vector<32x384xbf16>
    %77 = arith.extf %76 : vector<32x384xbf16> to vector<32x384xf32>
    %78 = arith.truncf %73 : vector<32x128xf32> to vector<32x128xbf16>
    %cst_20 = arith.constant dense<0.000000e+00> : vector<32x384xf32>
    %79 = tpu.matmul %78, %3, %cst_20 {dimension_numbers = #tpu.dot_dimension_numbers<[1], [0], [0], [1], [0, 0, 1, 1], [], []>} : vector<32x128xbf16>, vector<128x384xbf16>, vector<32x384xf32> -> vector<32x384xf32>
    %80 = vector.extract_strided_slice %77 {offsets = [0, 0], sizes = [32, 128], strides = [1, 1]} : vector<32x384xf32> to vector<32x128xf32>
    %81 = vector.extract_strided_slice %79 {offsets = [0, 0], sizes = [32, 128], strides = [1, 1]} : vector<32x384xf32> to vector<32x128xf32>
    %82 = arith.addf %80, %81 : vector<32x128xf32>
    %83 = arith.negf %82 : vector<32x128xf32>
    %84 = math.exp %83 : vector<32x128xf32>
    %cst_21 = arith.constant 1.000000e+00 : f32
    %85 = vector.broadcast %cst_21 : f32 to vector<32x128xf32>
    %86 = arith.addf %85, %84 : vector<32x128xf32>
    %87 = arith.divf %85, %86 : vector<32x128xf32>
    %88 = vector.extract_strided_slice %77 {offsets = [0, 128], sizes = [32, 128], strides = [1, 1]} : vector<32x384xf32> to vector<32x128xf32>
    %89 = vector.extract_strided_slice %79 {offsets = [0, 128], sizes = [32, 128], strides = [1, 1]} : vector<32x384xf32> to vector<32x128xf32>
    %90 = arith.addf %88, %89 : vector<32x128xf32>
    %91 = arith.negf %90 : vector<32x128xf32>
    %92 = math.exp %91 : vector<32x128xf32>
    %cst_22 = arith.constant 1.000000e+00 : f32
    %93 = vector.broadcast %cst_22 : f32 to vector<32x128xf32>
    %94 = arith.addf %93, %92 : vector<32x128xf32>
    %95 = arith.divf %93, %94 : vector<32x128xf32>
    %96 = vector.extract_strided_slice %77 {offsets = [0, 256], sizes = [32, 128], strides = [1, 1]} : vector<32x384xf32> to vector<32x128xf32>
    %97 = vector.extract_strided_slice %79 {offsets = [0, 256], sizes = [32, 128], strides = [1, 1]} : vector<32x384xf32> to vector<32x128xf32>
    %98 = vector.broadcast %4 : vector<1x128xf32> to vector<32x128xf32>
    %99 = arith.addf %97, %98 : vector<32x128xf32>
    %100 = arith.mulf %87, %99 : vector<32x128xf32>
    %101 = arith.addf %96, %100 : vector<32x128xf32>
    %102 = math.tanh %101 : vector<32x128xf32>
    %cst_23 = arith.constant 1.000000e+00 : f32
    %103 = vector.broadcast %cst_23 : f32 to vector<32x128xf32>
    %104 = arith.subf %103, %95 : vector<32x128xf32>
    %105 = arith.mulf %104, %102 : vector<32x128xf32>
    %106 = arith.mulf %95, %73 : vector<32x128xf32>
    %107 = arith.addf %105, %106 : vector<32x128xf32>
    %c3_i32 = arith.constant 3 : i32
    %108 = arith.index_cast %c3_i32 : i32 to index
    %c0_24 = arith.constant 0 : index
    %c0_25 = arith.constant 0 : index
    %109 = vector.load %arg2[%108, %c0_24, %c0_25] : memref<8x32x384xbf16, #tpu.memory_space<vmem>>, vector<1x32x384xbf16>
    %110 = vector.shape_cast %109 : vector<1x32x384xbf16> to vector<32x384xbf16>
    %111 = arith.extf %110 : vector<32x384xbf16> to vector<32x384xf32>
    %112 = arith.truncf %107 : vector<32x128xf32> to vector<32x128xbf16>
    %cst_26 = arith.constant dense<0.000000e+00> : vector<32x384xf32>
    %113 = tpu.matmul %112, %3, %cst_26 {dimension_numbers = #tpu.dot_dimension_numbers<[1], [0], [0], [1], [0, 0, 1, 1], [], []>} : vector<32x128xbf16>, vector<128x384xbf16>, vector<32x384xf32> -> vector<32x384xf32>
    %114 = vector.extract_strided_slice %111 {offsets = [0, 0], sizes = [32, 128], strides = [1, 1]} : vector<32x384xf32> to vector<32x128xf32>
    %115 = vector.extract_strided_slice %113 {offsets = [0, 0], sizes = [32, 128], strides = [1, 1]} : vector<32x384xf32> to vector<32x128xf32>
    %116 = arith.addf %114, %115 : vector<32x128xf32>
    %117 = arith.negf %116 : vector<32x128xf32>
    %118 = math.exp %117 : vector<32x128xf32>
    %cst_27 = arith.constant 1.000000e+00 : f32
    %119 = vector.broadcast %cst_27 : f32 to vector<32x128xf32>
    %120 = arith.addf %119, %118 : vector<32x128xf32>
    %121 = arith.divf %119, %120 : vector<32x128xf32>
    %122 = vector.extract_strided_slice %111 {offsets = [0, 128], sizes = [32, 128], strides = [1, 1]} : vector<32x384xf32> to vector<32x128xf32>
    %123 = vector.extract_strided_slice %113 {offsets = [0, 128], sizes = [32, 128], strides = [1, 1]} : vector<32x384xf32> to vector<32x128xf32>
    %124 = arith.addf %122, %123 : vector<32x128xf32>
    %125 = arith.negf %124 : vector<32x128xf32>
    %126 = math.exp %125 : vector<32x128xf32>
    %cst_28 = arith.constant 1.000000e+00 : f32
    %127 = vector.broadcast %cst_28 : f32 to vector<32x128xf32>
    %128 = arith.addf %127, %126 : vector<32x128xf32>
    %129 = arith.divf %127, %128 : vector<32x128xf32>
    %130 = vector.extract_strided_slice %111 {offsets = [0, 256], sizes = [32, 128], strides = [1, 1]} : vector<32x384xf32> to vector<32x128xf32>
    %131 = vector.extract_strided_slice %113 {offsets = [0, 256], sizes = [32, 128], strides = [1, 1]} : vector<32x384xf32> to vector<32x128xf32>
    %132 = vector.broadcast %4 : vector<1x128xf32> to vector<32x128xf32>
    %133 = arith.addf %131, %132 : vector<32x128xf32>
    %134 = arith.mulf %121, %133 : vector<32x128xf32>
    %135 = arith.addf %130, %134 : vector<32x128xf32>
    %136 = math.tanh %135 : vector<32x128xf32>
    %cst_29 = arith.constant 1.000000e+00 : f32
    %137 = vector.broadcast %cst_29 : f32 to vector<32x128xf32>
    %138 = arith.subf %137, %129 : vector<32x128xf32>
    %139 = arith.mulf %138, %136 : vector<32x128xf32>
    %140 = arith.mulf %129, %107 : vector<32x128xf32>
    %141 = arith.addf %139, %140 : vector<32x128xf32>
    %c4_i32 = arith.constant 4 : i32
    %142 = arith.index_cast %c4_i32 : i32 to index
    %c0_30 = arith.constant 0 : index
    %c0_31 = arith.constant 0 : index
    %143 = vector.load %arg2[%142, %c0_30, %c0_31] : memref<8x32x384xbf16, #tpu.memory_space<vmem>>, vector<1x32x384xbf16>
    %144 = vector.shape_cast %143 : vector<1x32x384xbf16> to vector<32x384xbf16>
    %145 = arith.extf %144 : vector<32x384xbf16> to vector<32x384xf32>
    %146 = arith.truncf %141 : vector<32x128xf32> to vector<32x128xbf16>
    %cst_32 = arith.constant dense<0.000000e+00> : vector<32x384xf32>
    %147 = tpu.matmul %146, %3, %cst_32 {dimension_numbers = #tpu.dot_dimension_numbers<[1], [0], [0], [1], [0, 0, 1, 1], [], []>} : vector<32x128xbf16>, vector<128x384xbf16>, vector<32x384xf32> -> vector<32x384xf32>
    %148 = vector.extract_strided_slice %145 {offsets = [0, 0], sizes = [32, 128], strides = [1, 1]} : vector<32x384xf32> to vector<32x128xf32>
    %149 = vector.extract_strided_slice %147 {offsets = [0, 0], sizes = [32, 128], strides = [1, 1]} : vector<32x384xf32> to vector<32x128xf32>
    %150 = arith.addf %148, %149 : vector<32x128xf32>
    %151 = arith.negf %150 : vector<32x128xf32>
    %152 = math.exp %151 : vector<32x128xf32>
    %cst_33 = arith.constant 1.000000e+00 : f32
    %153 = vector.broadcast %cst_33 : f32 to vector<32x128xf32>
    %154 = arith.addf %153, %152 : vector<32x128xf32>
    %155 = arith.divf %153, %154 : vector<32x128xf32>
    %156 = vector.extract_strided_slice %145 {offsets = [0, 128], sizes = [32, 128], strides = [1, 1]} : vector<32x384xf32> to vector<32x128xf32>
    %157 = vector.extract_strided_slice %147 {offsets = [0, 128], sizes = [32, 128], strides = [1, 1]} : vector<32x384xf32> to vector<32x128xf32>
    %158 = arith.addf %156, %157 : vector<32x128xf32>
    %159 = arith.negf %158 : vector<32x128xf32>
    %160 = math.exp %159 : vector<32x128xf32>
    %cst_34 = arith.constant 1.000000e+00 : f32
    %161 = vector.broadcast %cst_34 : f32 to vector<32x128xf32>
    %162 = arith.addf %161, %160 : vector<32x128xf32>
    %163 = arith.divf %161, %162 : vector<32x128xf32>
    %164 = vector.extract_strided_slice %145 {offsets = [0, 256], sizes = [32, 128], strides = [1, 1]} : vector<32x384xf32> to vector<32x128xf32>
    %165 = vector.extract_strided_slice %147 {offsets = [0, 256], sizes = [32, 128], strides = [1, 1]} : vector<32x384xf32> to vector<32x128xf32>
    %166 = vector.broadcast %4 : vector<1x128xf32> to vector<32x128xf32>
    %167 = arith.addf %165, %166 : vector<32x128xf32>
    %168 = arith.mulf %155, %167 : vector<32x128xf32>
    %169 = arith.addf %164, %168 : vector<32x128xf32>
    %170 = math.tanh %169 : vector<32x128xf32>
    %cst_35 = arith.constant 1.000000e+00 : f32
    %171 = vector.broadcast %cst_35 : f32 to vector<32x128xf32>
    %172 = arith.subf %171, %163 : vector<32x128xf32>
    %173 = arith.mulf %172, %170 : vector<32x128xf32>
    %174 = arith.mulf %163, %141 : vector<32x128xf32>
    %175 = arith.addf %173, %174 : vector<32x128xf32>
    %c5_i32 = arith.constant 5 : i32
    %176 = arith.index_cast %c5_i32 : i32 to index
    %c0_36 = arith.constant 0 : index
    %c0_37 = arith.constant 0 : index
    %177 = vector.load %arg2[%176, %c0_36, %c0_37] : memref<8x32x384xbf16, #tpu.memory_space<vmem>>, vector<1x32x384xbf16>
    %178 = vector.shape_cast %177 : vector<1x32x384xbf16> to vector<32x384xbf16>
    %179 = arith.extf %178 : vector<32x384xbf16> to vector<32x384xf32>
    %180 = arith.truncf %175 : vector<32x128xf32> to vector<32x128xbf16>
    %cst_38 = arith.constant dense<0.000000e+00> : vector<32x384xf32>
    %181 = tpu.matmul %180, %3, %cst_38 {dimension_numbers = #tpu.dot_dimension_numbers<[1], [0], [0], [1], [0, 0, 1, 1], [], []>} : vector<32x128xbf16>, vector<128x384xbf16>, vector<32x384xf32> -> vector<32x384xf32>
    %182 = vector.extract_strided_slice %179 {offsets = [0, 0], sizes = [32, 128], strides = [1, 1]} : vector<32x384xf32> to vector<32x128xf32>
    %183 = vector.extract_strided_slice %181 {offsets = [0, 0], sizes = [32, 128], strides = [1, 1]} : vector<32x384xf32> to vector<32x128xf32>
    %184 = arith.addf %182, %183 : vector<32x128xf32>
    %185 = arith.negf %184 : vector<32x128xf32>
    %186 = math.exp %185 : vector<32x128xf32>
    %cst_39 = arith.constant 1.000000e+00 : f32
    %187 = vector.broadcast %cst_39 : f32 to vector<32x128xf32>
    %188 = arith.addf %187, %186 : vector<32x128xf32>
    %189 = arith.divf %187, %188 : vector<32x128xf32>
    %190 = vector.extract_strided_slice %179 {offsets = [0, 128], sizes = [32, 128], strides = [1, 1]} : vector<32x384xf32> to vector<32x128xf32>
    %191 = vector.extract_strided_slice %181 {offsets = [0, 128], sizes = [32, 128], strides = [1, 1]} : vector<32x384xf32> to vector<32x128xf32>
    %192 = arith.addf %190, %191 : vector<32x128xf32>
    %193 = arith.negf %192 : vector<32x128xf32>
    %194 = math.exp %193 : vector<32x128xf32>
    %cst_40 = arith.constant 1.000000e+00 : f32
    %195 = vector.broadcast %cst_40 : f32 to vector<32x128xf32>
    %196 = arith.addf %195, %194 : vector<32x128xf32>
    %197 = arith.divf %195, %196 : vector<32x128xf32>
    %198 = vector.extract_strided_slice %179 {offsets = [0, 256], sizes = [32, 128], strides = [1, 1]} : vector<32x384xf32> to vector<32x128xf32>
    %199 = vector.extract_strided_slice %181 {offsets = [0, 256], sizes = [32, 128], strides = [1, 1]} : vector<32x384xf32> to vector<32x128xf32>
    %200 = vector.broadcast %4 : vector<1x128xf32> to vector<32x128xf32>
    %201 = arith.addf %199, %200 : vector<32x128xf32>
    %202 = arith.mulf %189, %201 : vector<32x128xf32>
    %203 = arith.addf %198, %202 : vector<32x128xf32>
    %204 = math.tanh %203 : vector<32x128xf32>
    %cst_41 = arith.constant 1.000000e+00 : f32
    %205 = vector.broadcast %cst_41 : f32 to vector<32x128xf32>
    %206 = arith.subf %205, %197 : vector<32x128xf32>
    %207 = arith.mulf %206, %204 : vector<32x128xf32>
    %208 = arith.mulf %197, %175 : vector<32x128xf32>
    %209 = arith.addf %207, %208 : vector<32x128xf32>
    %c6_i32 = arith.constant 6 : i32
    %210 = arith.index_cast %c6_i32 : i32 to index
    %c0_42 = arith.constant 0 : index
    %c0_43 = arith.constant 0 : index
    %211 = vector.load %arg2[%210, %c0_42, %c0_43] : memref<8x32x384xbf16, #tpu.memory_space<vmem>>, vector<1x32x384xbf16>
    %212 = vector.shape_cast %211 : vector<1x32x384xbf16> to vector<32x384xbf16>
    %213 = arith.extf %212 : vector<32x384xbf16> to vector<32x384xf32>
    %214 = arith.truncf %209 : vector<32x128xf32> to vector<32x128xbf16>
    %cst_44 = arith.constant dense<0.000000e+00> : vector<32x384xf32>
    %215 = tpu.matmul %214, %3, %cst_44 {dimension_numbers = #tpu.dot_dimension_numbers<[1], [0], [0], [1], [0, 0, 1, 1], [], []>} : vector<32x128xbf16>, vector<128x384xbf16>, vector<32x384xf32> -> vector<32x384xf32>
    %216 = vector.extract_strided_slice %213 {offsets = [0, 0], sizes = [32, 128], strides = [1, 1]} : vector<32x384xf32> to vector<32x128xf32>
    %217 = vector.extract_strided_slice %215 {offsets = [0, 0], sizes = [32, 128], strides = [1, 1]} : vector<32x384xf32> to vector<32x128xf32>
    %218 = arith.addf %216, %217 : vector<32x128xf32>
    %219 = arith.negf %218 : vector<32x128xf32>
    %220 = math.exp %219 : vector<32x128xf32>
    %cst_45 = arith.constant 1.000000e+00 : f32
    %221 = vector.broadcast %cst_45 : f32 to vector<32x128xf32>
    %222 = arith.addf %221, %220 : vector<32x128xf32>
    %223 = arith.divf %221, %222 : vector<32x128xf32>
    %224 = vector.extract_strided_slice %213 {offsets = [0, 128], sizes = [32, 128], strides = [1, 1]} : vector<32x384xf32> to vector<32x128xf32>
    %225 = vector.extract_strided_slice %215 {offsets = [0, 128], sizes = [32, 128], strides = [1, 1]} : vector<32x384xf32> to vector<32x128xf32>
    %226 = arith.addf %224, %225 : vector<32x128xf32>
    %227 = arith.negf %226 : vector<32x128xf32>
    %228 = math.exp %227 : vector<32x128xf32>
    %cst_46 = arith.constant 1.000000e+00 : f32
    %229 = vector.broadcast %cst_46 : f32 to vector<32x128xf32>
    %230 = arith.addf %229, %228 : vector<32x128xf32>
    %231 = arith.divf %229, %230 : vector<32x128xf32>
    %232 = vector.extract_strided_slice %213 {offsets = [0, 256], sizes = [32, 128], strides = [1, 1]} : vector<32x384xf32> to vector<32x128xf32>
    %233 = vector.extract_strided_slice %215 {offsets = [0, 256], sizes = [32, 128], strides = [1, 1]} : vector<32x384xf32> to vector<32x128xf32>
    %234 = vector.broadcast %4 : vector<1x128xf32> to vector<32x128xf32>
    %235 = arith.addf %233, %234 : vector<32x128xf32>
    %236 = arith.mulf %223, %235 : vector<32x128xf32>
    %237 = arith.addf %232, %236 : vector<32x128xf32>
    %238 = math.tanh %237 : vector<32x128xf32>
    %cst_47 = arith.constant 1.000000e+00 : f32
    %239 = vector.broadcast %cst_47 : f32 to vector<32x128xf32>
    %240 = arith.subf %239, %231 : vector<32x128xf32>
    %241 = arith.mulf %240, %238 : vector<32x128xf32>
    %242 = arith.mulf %231, %209 : vector<32x128xf32>
    %243 = arith.addf %241, %242 : vector<32x128xf32>
    %c7_i32 = arith.constant 7 : i32
    %244 = arith.index_cast %c7_i32 : i32 to index
    %c0_48 = arith.constant 0 : index
    %c0_49 = arith.constant 0 : index
    %245 = vector.load %arg2[%244, %c0_48, %c0_49] : memref<8x32x384xbf16, #tpu.memory_space<vmem>>, vector<1x32x384xbf16>
    %246 = vector.shape_cast %245 : vector<1x32x384xbf16> to vector<32x384xbf16>
    %247 = arith.extf %246 : vector<32x384xbf16> to vector<32x384xf32>
    %248 = arith.truncf %243 : vector<32x128xf32> to vector<32x128xbf16>
    %cst_50 = arith.constant dense<0.000000e+00> : vector<32x384xf32>
    %249 = tpu.matmul %248, %3, %cst_50 {dimension_numbers = #tpu.dot_dimension_numbers<[1], [0], [0], [1], [0, 0, 1, 1], [], []>} : vector<32x128xbf16>, vector<128x384xbf16>, vector<32x384xf32> -> vector<32x384xf32>
    %250 = vector.extract_strided_slice %247 {offsets = [0, 0], sizes = [32, 128], strides = [1, 1]} : vector<32x384xf32> to vector<32x128xf32>
    %251 = vector.extract_strided_slice %249 {offsets = [0, 0], sizes = [32, 128], strides = [1, 1]} : vector<32x384xf32> to vector<32x128xf32>
    %252 = arith.addf %250, %251 : vector<32x128xf32>
    %253 = arith.negf %252 : vector<32x128xf32>
    %254 = math.exp %253 : vector<32x128xf32>
    %cst_51 = arith.constant 1.000000e+00 : f32
    %255 = vector.broadcast %cst_51 : f32 to vector<32x128xf32>
    %256 = arith.addf %255, %254 : vector<32x128xf32>
    %257 = arith.divf %255, %256 : vector<32x128xf32>
    %258 = vector.extract_strided_slice %247 {offsets = [0, 128], sizes = [32, 128], strides = [1, 1]} : vector<32x384xf32> to vector<32x128xf32>
    %259 = vector.extract_strided_slice %249 {offsets = [0, 128], sizes = [32, 128], strides = [1, 1]} : vector<32x384xf32> to vector<32x128xf32>
    %260 = arith.addf %258, %259 : vector<32x128xf32>
    %261 = arith.negf %260 : vector<32x128xf32>
    %262 = math.exp %261 : vector<32x128xf32>
    %cst_52 = arith.constant 1.000000e+00 : f32
    %263 = vector.broadcast %cst_52 : f32 to vector<32x128xf32>
    %264 = arith.addf %263, %262 : vector<32x128xf32>
    %265 = arith.divf %263, %264 : vector<32x128xf32>
    %266 = vector.extract_strided_slice %247 {offsets = [0, 256], sizes = [32, 128], strides = [1, 1]} : vector<32x384xf32> to vector<32x128xf32>
    %267 = vector.extract_strided_slice %249 {offsets = [0, 256], sizes = [32, 128], strides = [1, 1]} : vector<32x384xf32> to vector<32x128xf32>
    %268 = vector.broadcast %4 : vector<1x128xf32> to vector<32x128xf32>
    %269 = arith.addf %267, %268 : vector<32x128xf32>
    %270 = arith.mulf %257, %269 : vector<32x128xf32>
    %271 = arith.addf %266, %270 : vector<32x128xf32>
    %272 = math.tanh %271 : vector<32x128xf32>
    %cst_53 = arith.constant 1.000000e+00 : f32
    %273 = vector.broadcast %cst_53 : f32 to vector<32x128xf32>
    %274 = arith.subf %273, %265 : vector<32x128xf32>
    %275 = arith.mulf %274, %272 : vector<32x128xf32>
    %276 = arith.mulf %265, %243 : vector<32x128xf32>
    %277 = arith.addf %275, %276 : vector<32x128xf32>
    %c8_i32 = arith.constant 8 : i32
    %c0_54 = arith.constant 0 : index
    %c0_55 = arith.constant 0 : index
    %278 = vector.load %arg8[%c0_54, %c0_55] : memref<32x128xf32, #tpu.memory_space<vmem>>, vector<32x128xf32>
    tpu.vector_store %arg8[%c0_54, %c0_55], %277 {strides = array<i32>} : memref<32x128xf32, #tpu.memory_space<vmem>>, vector<32x128xf32>,
    %c0_i32_56 = arith.constant 0 : i32
    %279 = arith.cmpi eq, %arg1, %c0_i32_56 : i32
    %280 = arith.extui %279 : i1 to i32
    %c0_i32_57 = arith.constant 0 : i32
    %281 = arith.cmpi ne, %280, %c0_i32_57 : i32
    scf.if %281 {
      %282 = arith.truncf %277 : vector<32x128xf32> to vector<32x128xbf16>
      %c0_58 = arith.constant 0 : index
      %c0_59 = arith.constant 0 : index
      %283 = vector.load %arg5[%c0_58, %c0_59] : memref<128x128xbf16, #tpu.memory_space<vmem>>, vector<128x128xbf16>
      %cst_60 = arith.constant dense<0.000000e+00> : vector<32x128xf32>
      %284 = tpu.matmul %282, %283, %cst_60 {dimension_numbers = #tpu.dot_dimension_numbers<[1], [0], [0], [1], [0, 0, 1, 1], [], []>} : vector<32x128xbf16>, vector<128x128xbf16>, vector<32x128xf32> -> vector<32x128xf32>
      %c0_61 = arith.constant 0 : index
      %c0_62 = arith.constant 0 : index
      %285 = vector.load %arg6[%c0_61, %c0_62] : memref<1x128xf32, #tpu.memory_space<vmem>>, vector<1x128xf32>
      %286 = vector.broadcast %285 : vector<1x128xf32> to vector<32x128xf32>
      %287 = arith.addf %284, %286 : vector<32x128xf32>
      %c0_63 = arith.constant 0 : index
      %c0_64 = arith.constant 0 : index
      %288 = vector.load %arg7[%c0_63, %c0_64] : memref<32x128xf32, #tpu.memory_space<vmem>>, vector<32x128xf32>
      tpu.vector_store %arg7[%c0_63, %c0_64], %287 {strides = array<i32>} : memref<32x128xf32, #tpu.memory_space<vmem>>, vector<32x128xf32>,
    } else {
    }
    return
  }
  func.func @transform_0(%arg0: i32, %arg1: i32) -> (i32, i32, i32) {
    %c0_i32 = arith.constant 0 : i32
    %c0_i32_0 = arith.constant 0 : i32
    return %arg1, %arg0, %c0_i32 : i32, i32, i32
  }
  func.func @transform_1(%arg0: i32, %arg1: i32) -> (i32, i32) {
    %c0_i32 = arith.constant 0 : i32
    %c0_i32_0 = arith.constant 0 : i32
    %c0_i32_1 = arith.constant 0 : i32
    return %c0_i32, %c0_i32_0 : i32, i32
  }
  func.func @transform_2(%arg0: i32, %arg1: i32) -> (i32, i32) {
    %c0_i32 = arith.constant 0 : i32
    %c0_i32_0 = arith.constant 0 : i32
    %c0_i32_1 = arith.constant 0 : i32
    return %c0_i32, %c0_i32_0 : i32, i32
  }
  func.func @transform_3(%arg0: i32, %arg1: i32) -> (i32, i32) {
    %c0_i32 = arith.constant 0 : i32
    %c0_i32_0 = arith.constant 0 : i32
    %c0_i32_1 = arith.constant 0 : i32
    return %c0_i32, %c0_i32_0 : i32, i32
  }
  func.func @transform_4(%arg0: i32, %arg1: i32) -> (i32, i32) {
    %c0_i32 = arith.constant 0 : i32
    %c0_i32_0 = arith.constant 0 : i32
    %c0_i32_1 = arith.constant 0 : i32
    return %c0_i32, %c0_i32_0 : i32, i32
  }
  func.func @transform_5(%arg0: i32, %arg1: i32) -> (i32, i32) {
    %c0_i32 = arith.constant 0 : i32
    %c0_i32_0 = arith.constant 0 : i32
    return %arg0, %c0_i32 : i32, i32
  }
}

</mosaic_0001>

<bundles_post_ra>
// kernel: st_predictor_forward.1
= control target key start
LH: loop header
LB: loop body
LE: loop exit
PB: predicated region body
PF: predicated region fallthrough
CT: control target
= control target key end

     0   :  { %v2852_v1 = vmov 0   ;;  %v2853_v2 = vmov 0.0|0.0   ;;  %s3736_s1 = inlined_call_operand.vmem [shape: bf16[128,384], index: 1, kind: input, shape index: {}]   ;;  %s3737_s0 = inlined_call_operand.vmem [shape: bf16[8,32,384], index: 0, kind: input, shape index: {}]   ;;  %s3738_s2 = inlined_call_operand.vmem [shape: f32[1,128], index: 2, kind: input, shape index: {}]   ;;  %s3739_s3 = inlined_call_operand.vmem [shape: bf16[128,128], index: 3, kind: input, shape index: {}]   ;;  %s3740_s4 = inlined_call_operand.vmem [shape: f32[1,128], index: 4, kind: input, shape index: {}]   ;;  %s3741_s5 = inlined_call_operand.vmem [shape: f32[32,128], index: 5, kind: output, shape index: {}]  }
   0x1   :  { %v2887_v0 = vld [vmem:[%s3736_s1 + $0x4] ss:$12 sps:$4 sm:$0xff]   ;;  %248 = vmatprep.mubr.bf16.mxu0 %v2852_v1  ;;  %2300 = vmatprep.mubr.bf16.mxu1 %v2853_v2  ;;  %v2894_v3 = vld [vmem:[%s3736_s1] ss:$12 sps:$4 sm:$0xff]   ;;  %v2900_v4 = vld [vmem:[%s3736_s1 + $0x1c] ss:$12 sps:$4 sm:$0xff]  }
   0x2   :  { %216 = vmatprep.subr.bf16.mxu0 %v2887_v0  ;;  %v2906_v5 = vld [vmem:[%s3736_s1 + $0x18] ss:$12 sps:$4 sm:$0xff]   ;;  %v2912_v6 = vld [vmem:[%s3736_s1 + $0x34] ss:$12 sps:$4 sm:$0xff]   ;;  %v2918_v7 = vld [vmem:[%s3736_s1 + $0x30] ss:$12 sps:$4 sm:$0xff]  }
   0x3   :  { %217 = vmatpush1.bf16.msra.mxu0 %v2894_v3  ;;  %v2923_v8 = vld [vmem:[%s3736_s1 + $0x4c] ss:$12 sps:$4 sm:$0xff]   ;;  %v2929_v9 = vld [vmem:[%s3736_s1 + $0x8] ss:$12 sps:$4 sm:$0xff]   ;;  %v2948_v12 = vld [vmem:[%s3736_s1 + $0x64] ss:$12 sps:$4 sm:$0xff]  }
   0x4   :  { %218 = vmatprep.subr.bf16.mxu0 %v2900_v4  ;;  %v2934_v10 = vld [vmem:[%s3736_s1 + $0x48] ss:$12 sps:$4 sm:$0xff]   ;;  %2284 = vmatprep.subr.bf16.mxu1 %v2929_v9  ;;  %v2942_v11 = vld [vmem:[%s3736_s1 + $0x20] ss:$12 sps:$4 sm:$0xff]   ;;  %v2954_v13 = vld [vmem:[%s3736_s1 + $0x38] ss:$12 sps:$4 sm:$0xff]  }
   0x5   :  { %2285 = vmatpush3.bf16.msra.mxu1 %v2929_v9  ;;  %v2959_v14 = vld [vmem:[%s3736_s1 + $0x60] ss:$12 sps:$4 sm:$0xff]   ;;  %v2965_v15 = vld [vmem:[%s3736_s1 + $0x7c] ss:$12 sps:$4 sm:$0xff]   ;;  %v2979_v17 = vld [vmem:[%s3736_s1 + $0x78] ss:$12 sps:$4 sm:$0xff]  }
   0x6   :  { %2286 = vmatprep.subr.bf16.mxu1 %v2942_v11  ;;  %v2973_v16 = vld [vmem:[%s3736_s1 + $0x50] ss:$12 sps:$4 sm:$0xff]   ;;  %v2986_v18 = vld [vmem:[%s3736_s1 + $0x94] ss:$12 sps:$4 sm:$0xff]   ;;  %v3005_v21 = vld [vmem:[%s3736_s1 + $0xac] ss:$12 sps:$4 sm:$0xff]  }
   0x7   :  { %219 = vmatpush1.bf16.msra.mxu0 %v2906_v5  ;;  %v2992_v19 = vld [vmem:[%s3736_s1 + $0x68] ss:$12 sps:$4 sm:$0xff]   ;;  %v2998_v20 = vld [vmem:[%s3736_s1 + $0x90] ss:$12 sps:$4 sm:$0xff]   ;;  %v3011_v22 = vld [vmem:[%s3736_s1 + $0x80] ss:$12 sps:$4 sm:$0xff]  }
   0x8   :  { %220 = vmatprep.subr.bf16.mxu0 %v2912_v6  ;;  %v3017_v23 = vld [vmem:[%s3736_s1 + $0xa8] ss:$12 sps:$4 sm:$0xff]   ;;  %v3025_v24 = vld [vmem:[%s3736_s1 + $0x98] ss:$12 sps:$4 sm:$0xff]   ;;  %v3033_v25 = vld [vmem:[%s3736_s1 + $0xb0] ss:$12 sps:$4 sm:$0xff]  }
   0x9   :  { %2287 = vmatpush3.bf16.msra.mxu1 %v2942_v11  ;;  %v66_v26 = vld [vmem:[%s3737_s0] sm:$0xff]  ;;  %v68_v27 = vld [vmem:[%s3737_s0 + $0xc] sm:$0xff]  ;;  %v70_v36 = vld [vmem:[%s3737_s0 + $0x18] sm:$0xff] }
   0xa   :  { %2288 = vmatprep.subr.bf16.mxu1 %v2954_v13  ;;  %v74_v28 = vunpack.c.l.bf16 %v66_v26  ;;  %v77_v29 = vunpack.c.l.bf16 %v68_v27  ;;  %v75_v31 = vunpack.c.h.bf16 %v66_v26  ;;  %v78_v35 = vunpack.c.h.bf16 %v68_v27  ;;  %v72_v41 = vld [vmem:[%s3737_s0 + $0x24] sm:$0xff] }
   0xb   :  { %221 = vmatpush1.bf16.msra.mxu0 %v2918_v7  ;;  %v80_v43 = vunpack.c.l.bf16 %v70_v36  ;;  %v81_v45 = vunpack.c.h.bf16 %v70_v36  ;;  %v83_v46 = vunpack.c.l.bf16 %v72_v41  ;;  %v84_v55 = vunpack.c.h.bf16 %v72_v41  ;;  %v71_v36 = vld [vmem:[%s3737_s0 + $0x8] ss:$24 sps:$4 sm:$0xff]   ;;  %v73_v41 = vld [vmem:[%s3737_s0 + $0x14] ss:$24 sps:$4 sm:$0xff]  }
   0xc   :  { %222 = vmatprep.subr.bf16.mxu0 %v2923_v8 }
   0xd   :  { %2289 = vmatpush3.bf16.msra.mxu1 %v2954_v13 }
   0xe   :  { %2290 = vmatprep.subr.bf16.mxu1 %v2973_v16 }
   0xf   :  { %223 = vmatpush1.bf16.msra.mxu0 %v2934_v10 }
  0x10   :  { %224 = vmatprep.subr.bf16.mxu0 %v2948_v12 }
  0x11   :  { %2291 = vmatpush3.bf16.msra.mxu1 %v2973_v16 }
  0x12   :  { %2292 = vmatprep.subr.bf16.mxu1 %v2992_v19 }
  0x13   :  { %225 = vmatpush1.bf16.msra.mxu0 %v2959_v14 }
  0x14   :  { %226 = vmatprep.subr.bf16.mxu0 %v2965_v15 }
  0x15   :  { %2293 = vmatpush3.bf16.msra.mxu1 %v2992_v19 }
  0x16   :  { %2294 = vmatprep.subr.bf16.mxu1 %v3011_v22 }
  0x17   :  { %227 = vmatpush1.bf16.msra.mxu0 %v2979_v17 }
  0x18   :  { %228 = vmatprep.subr.bf16.mxu0 %v2986_v18 }
  0x19   :  { %2295 = vmatpush3.bf16.msra.mxu1 %v3011_v22 }
  0x1a   :  { %2296 = vmatprep.subr.bf16.mxu1 %v3025_v24 }
  0x1b   :  { %229 = vmatpush1.bf16.msra.mxu0 %v2998_v20 }
  0x1c   :  { %230 = vmatprep.subr.bf16.mxu0 %v3005_v21 }
  0x1d   :  { %2297 = vmatpush3.bf16.msra.mxu1 %v3025_v24 }
  0x1e   :  { %2298 = vmatprep.subr.bf16.mxu1 %v3033_v25 }
  0x1f   :  { %231 = vmatpush1.bf16.msra.mxu0 %v3017_v23 }
  0x20   :  { %435 = vmatprep.subr.bf16.mxu0 %v2887_v0 }
  0x21   :  { %2299 = vmatpush3.bf16.msra.mxu1 %v3033_v25 }
  0x22   :  { %249 = vmatmul.mubr.bf16.vlgmr.msra.gmra.mrb[0].mxu0 %v2853_v2  ;;  %2304 = vmatprep.subr.bf16.mxu1 %v2929_v9 }
  0x23   :  { %258 = vmatprep.mubr.bf16.mxu0 %v2852_v1  ;;  %436 = vmatpush1.bf16.msra.mxu0 %v2894_v3 }
  0x24   :  { %437 = vmatprep.subr.bf16.mxu0 %v2900_v4  ;;  %2301 = vmatmul.mubr.bf16.vlgmr.msra.gmra.mrb[0].mxu1 %v2853_v2 }
  0x25   :  { %2305 = vmatpush3.bf16.msra.mxu1 %v2929_v9 }
  0x26   :  { %2306 = vmatprep.subr.bf16.mxu1 %v2942_v11 }
  0x27   :  { %438 = vmatpush1.bf16.msra.mxu0 %v2906_v5 }
  0x28   :  { %439 = vmatprep.subr.bf16.mxu0 %v2912_v6 }
  0x29   :  { %2307 = vmatpush3.bf16.msra.mxu1 %v2942_v11 }
  0x2a   :  { %259 = vmatmul.mubr.bf16.gmra.mrb[4].mxu0 %v2853_v2  ;;  %2308 = vmatprep.subr.bf16.mxu1 %v2954_v13 }
  0x2b   :  { %467 = vmatprep.mubr.bf16.mxu0 %v2852_v1  ;;  %440 = vmatpush1.bf16.msra.mxu0 %v2918_v7 }
  0x2c   :  { %441 = vmatprep.subr.bf16.mxu0 %v2923_v8 }
  0x2d   :  { %2309 = vmatpush3.bf16.msra.mxu1 %v2954_v13 }
  0x2e   :  { %2310 = vmatprep.subr.bf16.mxu1 %v2973_v16 }
  0x2f   :  { %442 = vmatpush1.bf16.msra.mxu0 %v2934_v10 }
  0x30   :  { %443 = vmatprep.subr.bf16.mxu0 %v2948_v12 }
  0x31   :  { %2311 = vmatpush3.bf16.msra.mxu1 %v2973_v16 }
  0x32   :  { %2312 = vmatprep.subr.bf16.mxu1 %v2992_v19 }
  0x33   :  { %444 = vmatpush1.bf16.msra.mxu0 %v2959_v14 }
  0x34   :  { %445 = vmatprep.subr.bf16.mxu0 %v2965_v15 }
  0x35   :  { %2313 = vmatpush3.bf16.msra.mxu1 %v2992_v19 }
  0x36   :  { %2314 = vmatprep.subr.bf16.mxu1 %v3011_v22 }
  0x37   :  { %446 = vmatpush1.bf16.msra.mxu0 %v2979_v17 }
  0x38   :  { %447 = vmatprep.subr.bf16.mxu0 %v2986_v18 }
  0x39   :  { %2315 = vmatpush3.bf16.msra.mxu1 %v3011_v22 }
  0x3a   :  { %2316 = vmatprep.subr.bf16.mxu1 %v3025_v24 }
  0x3b   :  { %448 = vmatpush1.bf16.msra.mxu0 %v2998_v20 }
  0x3c   :  { %449 = vmatprep.subr.bf16.mxu0 %v3005_v21 }
  0x3d   :  { %2317 = vmatpush3.bf16.msra.mxu1 %v3025_v24 }
  0x3e   :  { %2318 = vmatprep.subr.bf16.mxu1 %v3033_v25 }
  0x3f   :  { %450 = vmatpush1.bf16.msra.mxu0 %v3017_v23 }
  0x40   :  { %648 = vmatprep.subr.bf16.mxu0 %v2887_v0 }
  0x41   :  { %2319 = vmatpush3.bf16.msra.mxu1 %v3033_v25 }
  0x42   :  { %2324 = vmatprep.subr.bf16.mxu1 %v2929_v9 }
  0xf5   :  { %v250_v30 = vpop.f32.mrb[0].mxu0 }
  0xf6   :  { %v318_v32 = vadd.f32 %v250_v30, %v74_v28  ;;  %v252_v33 = vpop.f32.mrb[1].mxu0 }
  0xf7   :  { %v254_v34 = vpop.f32.mrb[2].mxu0  ;;  %v346_v40 = vadd.f32 %v252_v33, %v75_v31  ;;  %v2302_v49 = vpop.f32.mrb[0].mxu1 }
  0xf8   :  { %v2064_v37 = vmul.f32 -1.442695, %v318_v32  ;;  %v319_v38 = vadd.f32 %v254_v34, %v77_v29  ;;  %v256_v39 = vpop.f32.mrb[3].mxu0  ;;  %v303_v52 = vpop.f32.mrb[1].mxu1  ;;  %v3092_v32 = vld [vmem:[%s3738_s2] ss:$0 sm:$0xff] }
  0xf9   :  { %v347_v44 = vadd.f32 %v256_v39, %v78_v35  ;;  %v2068_v47 = vmul.f32 -1.442695, %v346_v40  ;;  %v2303_v56 = vpop.f32.mrb[2].mxu1  ;;  %v380_v39 = vadd.f32 %v3092_v32, %v303_v52 }
  0xfa   :  { %2506 = vpow2.f32 %v2064_v37  ;;  %v2065_v42 = vmul.f32 -1.442695, %v319_v38  ;;  %v306_v61 = vpop.f32.mrb[3].mxu1 }
  0xfb   :  { %v2069_v53 = vmul.f32 -1.442695, %v347_v44 }
  0xfc   :  { %2508 = vpow2.f32 %v2065_v42 }
  0xfd   :  { %v260_v48 = vpop.f32.mrb[4].mxu0  ;;  %2510 = vpow2.f32 %v2068_v47  ;;  %v79_v47 = vunpack.c.l.bf16 %v73_v41 }
  0xfe   :  { %v320_v50 = vadd.f32 %v260_v48, %v80_v43  ;;  %v262_v51 = vpop.f32.mrb[5].mxu0  ;;  %v76_v43 = vunpack.c.l.bf16 %v71_v36  ;;  %v381_v48 = vadd.f32 %v3092_v32, %v306_v61 }
  0xff   :  { %v264_v54 = vpop.f32.mrb[6].mxu0  ;;  %v348_v58 = vadd.f32 %v262_v51, %v81_v45 }
 0x100   :  { %v2066_v57 = vmul.f32 -1.442695, %v320_v50  ;;  %v321_v59 = vadd.f32 %v264_v54, %v83_v46  ;;  %v266_v60 = vpop.f32.mrb[7].mxu0 }
 0x101   :  { %v349_v63 = vadd.f32 %v266_v60, %v84_v55  ;;  %v2070_v26 = vmul.f32 -1.442695, %v348_v58  ;;  %v82_v58 = vunpack.c.h.bf16 %v71_v36 }
 0x102   :  { %2512 = vpow2.f32 %v2066_v57  ;;  %v2067_v62 = vmul.f32 -1.442695, %v321_v59  ;;  %v382_v59 = vadd.f32 %v2302_v49, %v3092_v32 }
 0x103   :  { %2514 = vpow2.f32 %v2069_v53  ;;  %v2071_v30 = vmul.f32 -1.442695, %v349_v63  ;;  %v85_v63 = vunpack.c.h.bf16 %v73_v41 }
 0x104   :  { %v2507_v2 = vpop.eup %2506  ;;  %2516 = vpow2.f32 %v2067_v62 }
 0x105   :  { %v334_v27 = vadd.f32 1.0, %v2507_v2  ;;  %v383_v2 = vadd.f32 %v2303_v56, %v3092_v32 }
 0x106   :  { %v2509_v28 = vpop.eup %2508 }
 0x107   :  { %2518 = vrcp.f32 %v334_v27  ;;  %v335_v29 = vadd.f32 1.0, %v2509_v28  ;;  %v2511_v31 = vpop.eup %2510 }
 0x108   :  { %2520 = vpow2.f32 %v2070_v26  ;;  %v362_v38 = vadd.f32 1.0, %v2511_v31 }
 0x109   :  { %2522 = vrcp.f32 %v335_v29 }
 0x10a   :  { %2524 = vpow2.f32 %v2071_v30 }
 0x10c   :  { %v2513_v33 = vpop.eup %2512 }
 0x10d   :  { %v2515_v34 = vpop.eup %2514  ;;  %v336_v35 = vadd.f32 1.0, %v2513_v33 }
 0x10e   :  { %v2517_v37 = vpop.eup %2516  ;;  %v363_v42 = vadd.f32 1.0, %v2515_v34 }
 0x10f   :  { %2526 = vrcp.f32 %v336_v35  ;;  %v337_v40 = vadd.f32 1.0, %v2517_v37 }
 0x111   :  { %v2519_v44 = vpop.eup %2518  ;;  %2528 = vrcp.f32 %v337_v40 }
 0x112   :  { %v2521_v45 = vpop.eup %2520  ;;  %2530 = vrcp.f32 %v362_v38  ;;  %v384_v46 = vmul.f32 %v2519_v44, %v380_v39 }
 0x113   :  { %v2523_v50 = vpop.eup %2522  ;;  %2532 = vrcp.f32 %v363_v42  ;;  %v364_v54 = vadd.f32 1.0, %v2521_v45 }
 0x114   :  { %v388_v51 = vadd.f32 %v384_v46, %v76_v43  ;;  %v385_v52 = vmul.f32 %v2523_v50, %v381_v48  ;;  %v2525_v53 = vpop.eup %2524 }
 0x115   :  { %v365_v57 = vadd.f32 1.0, %v2525_v53 }
 0x116   :  { %2534 = vtanh.f32 %v388_v51  ;;  %v389_v55 = vadd.f32 %v385_v52, %v79_v47 }
 0x118   :  { %2536 = vtanh.f32 %v389_v55  ;;  %v2073_v55 = vld [vmem:[%s3737_s0 + $0x30] sm:$0xff] }
 0x119   :  { %v2527_v60 = vpop.eup %2526  ;;  %2538 = vrcp.f32 %v364_v54 }
 0x11a   :  { %v386_v62 = vmul.f32 %v2527_v60, %v382_v59  ;;  %2540 = vrcp.f32 %v365_v57  ;;  %v2075_v57 = vld [vmem:[%s3737_s0 + $0x3c] sm:$0xff] }
 0x11b   :  { %v2529_v61 = vpop.eup %2528  ;;  %v424_v59 = vunpack.c.l.bf16 %v2075_v57 }
 0x11c   :  { %v2531_v26 = vpop.eup %2530  ;;  %v390_v27 = vadd.f32 %v386_v62, %v82_v58  ;;  %v387_v28 = vmul.f32 %v2529_v61, %v383_v2  ;;  %v421_v58 = vunpack.c.l.bf16 %v2073_v55  ;;  %v422_v62 = vunpack.c.h.bf16 %v2073_v55 }
 0x11d   :  { %v2533_v29 = vpop.eup %2532  ;;  %v396_v31 = vsub.f32 1.0, %v2531_v26  ;;  %v404_v34 = vmul.f32 0.0, %v2531_v26  ;;  %v425_v26 = vunpack.c.h.bf16 %v2075_v57 }
 0x11e   :  { %2542 = vtanh.f32 %v390_v27  ;;  %v391_v30 = vadd.f32 %v387_v28, %v85_v63  ;;  %v397_v49 = vsub.f32 1.0, %v2533_v29  ;;  %v405_v37 = vmul.f32 0.0, %v2533_v29  ;;  %v2077_v27 = vld [vmem:[%s3737_s0 + $0x48] sm:$0xff] }
 0x120   :  { %v2535_v33 = vpop.eup %2534  ;;  %2544 = vtanh.f32 %v391_v30 }
 0x121   :  { %v400_v35 = vmul.f32 %v2535_v33, %v396_v31  ;;  %v2079_v33 = vld [vmem:[%s3737_s0 + $0x54] sm:$0xff] }
 0x122   :  { %v2537_v36 = vpop.eup %2536 }
 0x123   :  { %v401_v38 = vmul.f32 %v2537_v36, %v397_v49  ;;  %v3104_v39 = vadd.f32 %v404_v34, %v400_v35  ;;  %v2539_v56 = vpop.eup %2538  ;;  %v427_v49 = vunpack.c.l.bf16 %v2077_v27  ;;  %v428_v36 = vunpack.c.h.bf16 %v2077_v27 }
 0x124   :  { %v2541_v41 = vpop.eup %2540  ;;  %v398_v43 = vsub.f32 1.0, %v2539_v56  ;;  %v406_v47 = vmul.f32 0.0, %v2539_v56 }
 0x125   :  { %v3106_v40 = vadd.f32 %v405_v37, %v401_v38  ;;  %v399_v45 = vsub.f32 1.0, %v2541_v41  ;;  %v407_v51 = vmul.f32 0.0, %v2541_v41  ;;  %v430_v37 = vunpack.c.l.bf16 %v2079_v33 }
 0x127   :  { %v433_v42 = vpack.c.bf16 %v3106_v40, %v3104_v39 }
 0x128   :  { %v2543_v44 = vpop.eup %2542 }
 0x129   :  { %468 = vmatmul.mubr.bf16.vlgmr.msra.gmra.mrb[8].mxu0 %v433_v42  ;;  %2320 = vmatprep.mubr.bf16.mxu1 %v433_v42  ;;  %v402_v46 = vmul.f32 %v2543_v44, %v398_v43 }
 0x12a   :  { %v2545_v48 = vpop.eup %2544  ;;  %477 = vmatprep.mubr.bf16.mxu0 %v2852_v1  ;;  %649 = vmatpush1.bf16.msra.mxu0 %v2894_v3 }
 0x12b   :  { %v403_v50 = vmul.f32 %v2545_v48, %v399_v45  ;;  %v3112_v52 = vadd.f32 %v406_v47, %v402_v46  ;;  %650 = vmatprep.subr.bf16.mxu0 %v2900_v4  ;;  %v431_v48 = vunpack.c.h.bf16 %v2079_v33 }
 0x12d   :  { %v3115_v53 = vadd.f32 %v407_v51, %v403_v50 }
 0x12e   :  { %651 = vmatpush1.bf16.msra.mxu0 %v2906_v5 }
 0x12f   :  { %v434_v54 = vpack.c.bf16 %v3115_v53, %v3112_v52  ;;  %652 = vmatprep.subr.bf16.mxu0 %v2912_v6 }
 0x131   :  { %478 = vmatmul.mubr.bf16.gmra.mrb[12].mxu0 %v434_v54  ;;  %2321 = vmatmul.mubr.bf16.vlgmr.msra.gmra.mrb[4].mxu1 %v434_v54 }
 0x132   :  { %653 = vmatpush1.bf16.msra.mxu0 %v2918_v7  ;;  %2325 = vmatpush3.bf16.msra.mxu1 %v2929_v9 }
 0x133   :  { %654 = vmatprep.subr.bf16.mxu0 %v2923_v8  ;;  %2326 = vmatprep.subr.bf16.mxu1 %v2942_v11 }
 0x134   :  { %680 = vmatprep.mubr.bf16.mxu0 %v2852_v1 }
 0x136   :  { %655 = vmatpush1.bf16.msra.mxu0 %v2934_v10  ;;  %2327 = vmatpush3.bf16.msra.mxu1 %v2942_v11 }
 0x137   :  { %656 = vmatprep.subr.bf16.mxu0 %v2948_v12  ;;  %2328 = vmatprep.subr.bf16.mxu1 %v2954_v13 }
 0x13a   :  { %657 = vmatpush1.bf16.msra.mxu0 %v2959_v14  ;;  %2329 = vmatpush3.bf16.msra.mxu1 %v2954_v13 }
 0x13b   :  { %658 = vmatprep.subr.bf16.mxu0 %v2965_v15  ;;  %2330 = vmatprep.subr.bf16.mxu1 %v2973_v16 }
 0x13e   :  { %659 = vmatpush1.bf16.msra.mxu0 %v2979_v17  ;;  %2331 = vmatpush3.bf16.msra.mxu1 %v2973_v16 }
 0x13f   :  { %660 = vmatprep.subr.bf16.mxu0 %v2986_v18  ;;  %2332 = vmatprep.subr.bf16.mxu1 %v2992_v19 }
 0x142   :  { %661 = vmatpush1.bf16.msra.mxu0 %v2998_v20  ;;  %2333 = vmatpush3.bf16.msra.mxu1 %v2992_v19 }
 0x143   :  { %662 = vmatprep.subr.bf16.mxu0 %v3005_v21  ;;  %2334 = vmatprep.subr.bf16.mxu1 %v3011_v22 }
 0x146   :  { %663 = vmatpush1.bf16.msra.mxu0 %v3017_v23  ;;  %2335 = vmatpush3.bf16.msra.mxu1 %v3011_v22 }
 0x147   :  { %2336 = vmatprep.subr.bf16.mxu1 %v3025_v24  ;;  %861 = vmatprep.subr.bf16.mxu0 %v2887_v0 }
 0x14a   :  { %2337 = vmatpush3.bf16.msra.mxu1 %v3025_v24 }
 0x14b   :  { %2338 = vmatprep.subr.bf16.mxu1 %v3033_v25 }
 0x14e   :  { %2339 = vmatpush3.bf16.msra.mxu1 %v3033_v25 }
 0x14f   :  { %2344 = vmatprep.subr.bf16.mxu1 %v2929_v9 }
 0x1fc   :  { %v469_v60 = vpop.f32.mrb[8].mxu0 }
 0x1fd   :  { %v537_v63 = vadd.f32 %v469_v60, %v421_v58  ;;  %v471_v2 = vpop.f32.mrb[9].mxu0 }
 0x1fe   :  { %v473_v61 = vpop.f32.mrb[10].mxu0  ;;  %v565_v31 = vadd.f32 %v471_v2, %v422_v62 }
 0x1ff   :  { %v2081_v28 = vmul.f32 -1.442695, %v537_v63  ;;  %v538_v29 = vadd.f32 %v473_v61, %v424_v59  ;;  %v475_v30 = vpop.f32.mrb[11].mxu0 }
 0x200   :  { %v566_v35 = vadd.f32 %v475_v30, %v425_v26  ;;  %v2085_v38 = vmul.f32 -1.442695, %v565_v31  ;;  %v2078_v31 = vld [vmem:[%s3737_s0 + $0x38] ss:$24 sps:$4 sm:$0xff]  }
 0x201   :  { %2546 = vpow2.f32 %v2081_v28  ;;  %v2082_v34 = vmul.f32 -1.442695, %v538_v29 }
 0x202   :  { %v2086_v45 = vmul.f32 -1.442695, %v566_v35  ;;  %v2080_v35 = vld [vmem:[%s3737_s0 + $0x44] ss:$24 sps:$4 sm:$0xff]  }
 0x203   :  { %2548 = vpow2.f32 %v2082_v34 }
 0x204   :  { %v479_v56 = vpop.f32.mrb[12].mxu0  ;;  %v2322_v41 = vpop.f32.mrb[4].mxu1  ;;  %2550 = vpow2.f32 %v2085_v38 }
 0x205   :  { %v539_v42 = vadd.f32 %v479_v56, %v427_v49  ;;  %v481_v43 = vpop.f32.mrb[13].mxu0  ;;  %v522_v44 = vpop.f32.mrb[5].mxu1 }
 0x206   :  { %v483_v46 = vpop.f32.mrb[14].mxu0  ;;  %v2323_v47 = vpop.f32.mrb[6].mxu1  ;;  %v567_v51 = vadd.f32 %v481_v43, %v428_v36  ;;  %v593_v38 = vadd.f32 %v3092_v32, %v522_v44 }
 0x207   :  { %v2083_v50 = vmul.f32 -1.442695, %v539_v42  ;;  %v540_v54 = vadd.f32 %v483_v46, %v430_v37  ;;  %v485_v55 = vpop.f32.mrb[15].mxu0  ;;  %v525_v57 = vpop.f32.mrb[7].mxu1  ;;  %v423_v37 = vunpack.c.l.bf16 %v2078_v31 }
 0x208   :  { %v568_v59 = vadd.f32 %v485_v55, %v431_v48  ;;  %v2087_v62 = vmul.f32 -1.442695, %v567_v51  ;;  %v594_v46 = vadd.f32 %v3092_v32, %v525_v57 }
 0x209   :  { %2552 = vpow2.f32 %v2083_v50  ;;  %v2084_v58 = vmul.f32 -1.442695, %v540_v54 }
 0x20a   :  { %2554 = vpow2.f32 %v2086_v45  ;;  %v2088_v26 = vmul.f32 -1.442695, %v568_v59  ;;  %v426_v45 = vunpack.c.l.bf16 %v2080_v35  ;;  %v429_v59 = vunpack.c.h.bf16 %v2078_v31 }
 0x20b   :  { %v2547_v60 = vpop.eup %2546  ;;  %2556 = vpow2.f32 %v2084_v58 }
 0x20c   :  { %v553_v63 = vadd.f32 1.0, %v2547_v60  ;;  %v595_v60 = vadd.f32 %v2322_v41, %v3092_v32 }
 0x20d   :  { %v2549_v2 = vpop.eup %2548 }
 0x20e   :  { %2558 = vrcp.f32 %v553_v63  ;;  %v554_v61 = vadd.f32 1.0, %v2549_v2  ;;  %v2551_v27 = vpop.eup %2550  ;;  %v432_v2 = vunpack.c.h.bf16 %v2080_v35 }
 0x20f   :  { %2560 = vpow2.f32 %v2087_v62  ;;  %v581_v34 = vadd.f32 1.0, %v2551_v27 }
 0x210   :  { %2562 = vrcp.f32 %v554_v61  ;;  %v596_v61 = vadd.f32 %v2323_v47, %v3092_v32 }
 0x211   :  { %2564 = vpow2.f32 %v2088_v26 }
 0x213   :  { %v2553_v28 = vpop.eup %2552 }
 0x214   :  { %v2555_v29 = vpop.eup %2554  ;;  %v555_v30 = vadd.f32 1.0, %v2553_v28 }
 0x215   :  { %v2557_v33 = vpop.eup %2556  ;;  %v582_v36 = vadd.f32 1.0, %v2555_v29 }
 0x216   :  { %2566 = vrcp.f32 %v555_v30  ;;  %v556_v49 = vadd.f32 1.0, %v2557_v33 }
 0x218   :  { %v2559_v56 = vpop.eup %2558  ;;  %2568 = vrcp.f32 %v556_v49 }
 0x219   :  { %v2561_v42 = vpop.eup %2560  ;;  %2570 = vrcp.f32 %v581_v34  ;;  %v597_v43 = vmul.f32 %v2559_v56, %v593_v38 }
 0x21a   :  { %v2563_v48 = vpop.eup %2562  ;;  %2572 = vrcp.f32 %v582_v36  ;;  %v583_v55 = vadd.f32 1.0, %v2561_v42 }
 0x21b   :  { %v601_v50 = vadd.f32 %v597_v43, %v423_v37  ;;  %v598_v51 = vmul.f32 %v2563_v48, %v594_v46  ;;  %v2565_v54 = vpop.eup %2564 }
 0x21c   :  { %v584_v44 = vadd.f32 1.0, %v2565_v54 }
 0x21d   :  { %2574 = vtanh.f32 %v601_v50  ;;  %v602_v58 = vadd.f32 %v598_v51, %v426_v45 }
 0x21f   :  { %2576 = vtanh.f32 %v602_v58 }
 0x220   :  { %v2567_v62 = vpop.eup %2566  ;;  %2578 = vrcp.f32 %v583_v55 }
 0x221   :  { %v599_v63 = vmul.f32 %v2567_v62, %v595_v60  ;;  %2580 = vrcp.f32 %v584_v44 }
 0x222   :  { %v2569_v57 = vpop.eup %2568 }
 0x223   :  { %v2571_v26 = vpop.eup %2570  ;;  %v603_v27 = vadd.f32 %v599_v63, %v429_v59  ;;  %v600_v28 = vmul.f32 %v2569_v57, %v596_v61 }
 0x224   :  { %v2573_v29 = vpop.eup %2572  ;;  %v609_v33 = vsub.f32 1.0, %v2571_v26  ;;  %v617_v41 = vmul.f32 %v2571_v26, %v3104_v39 }
 0x225   :  { %2582 = vtanh.f32 %v603_v27  ;;  %v604_v30 = vadd.f32 %v600_v28, %v432_v2  ;;  %v610_v34 = vsub.f32 1.0, %v2573_v29  ;;  %v618_v35 = vmul.f32 %v2573_v29, %v3106_v40 }
 0x227   :  { %v2575_v31 = vpop.eup %2574  ;;  %2584 = vtanh.f32 %v604_v30 }
 0x228   :  { %v613_v49 = vmul.f32 %v2575_v31, %v609_v33 }
 0x229   :  { %v2577_v36 = vpop.eup %2576 }
 0x22a   :  { %v614_v37 = vmul.f32 %v2577_v36, %v610_v34  ;;  %v3174_v47 = vadd.f32 %v617_v41, %v613_v49  ;;  %v2579_v38 = vpop.eup %2578 }
 0x22b   :  { %v2581_v42 = vpop.eup %2580  ;;  %v611_v45 = vsub.f32 1.0, %v2579_v38  ;;  %v619_v50 = vmul.f32 %v2579_v38, %v3112_v52 }
 0x22c   :  { %v3176_v56 = vadd.f32 %v618_v35, %v614_v37  ;;  %v612_v39 = vsub.f32 1.0, %v2581_v42  ;;  %v620_v54 = vmul.f32 %v2581_v42, %v3115_v53 }
 0x22e   :  { %v646_v43 = vpack.c.bf16 %v3176_v56, %v3174_v47 }
 0x22f   :  { %v2583_v46 = vpop.eup %2582 }
 0x230   :  { %681 = vmatmul.mubr.bf16.vlgmr.msra.gmra.mrb[16].mxu0 %v646_v43  ;;  %2340 = vmatprep.mubr.bf16.mxu1 %v646_v43  ;;  %v615_v48 = vmul.f32 %v2583_v46, %v611_v45  ;;  %v2094_v43 = vld [vmem:[%s3737_s0 + $0x68] ss:$24 sps:$4 sm:$0xff]  }
 0x231   :  { %v2585_v51 = vpop.eup %2584  ;;  %690 = vmatprep.mubr.bf16.mxu0 %v2852_v1  ;;  %862 = vmatpush1.bf16.msra.mxu0 %v2894_v3  ;;  %v2089_v3 = vld [vmem:[%s3737_s0 + $0x60] sm:$0xff] }
 0x232   :  { %v616_v40 = vmul.f32 %v2585_v51, %v612_v39  ;;  %v3184_v55 = vadd.f32 %v619_v50, %v615_v48  ;;  %863 = vmatprep.subr.bf16.mxu0 %v2900_v4  ;;  %v2091_v4 = vld [vmem:[%s3737_s0 + $0x6c] sm:$0xff]  ;;  %v636_v51 = vunpack.c.l.bf16 %v2094_v43 }
 0x233   :  { %v2096_v48 = vld [vmem:[%s3737_s0 + $0x74] ss:$24 sps:$4 sm:$0xff]  }
 0x234   :  { %v3187_v58 = vadd.f32 %v620_v54, %v616_v40 }
 0x235   :  { %864 = vmatpush1.bf16.msra.mxu0 %v2906_v5  ;;  %v634_v5 = vunpack.c.l.bf16 %v2089_v3 }
 0x236   :  { %v647_v59 = vpack.c.bf16 %v3187_v58, %v3184_v55  ;;  %865 = vmatprep.subr.bf16.mxu0 %v2912_v6  ;;  %v637_v6 = vunpack.c.l.bf16 %v2091_v4 }
 0x238   :  { %691 = vmatmul.mubr.bf16.gmra.mrb[20].mxu0 %v647_v59  ;;  %2341 = vmatmul.mubr.bf16.vlgmr.msra.gmra.mrb[8].mxu1 %v647_v59 }
 0x239   :  { %866 = vmatpush1.bf16.msra.mxu0 %v2918_v7  ;;  %2345 = vmatpush3.bf16.msra.mxu1 %v2929_v9 }
 0x23a   :  { %867 = vmatprep.subr.bf16.mxu0 %v2923_v8  ;;  %2346 = vmatprep.subr.bf16.mxu1 %v2942_v11 }
 0x23b   :  { %893 = vmatprep.mubr.bf16.mxu0 %v2852_v1 }
 0x23d   :  { %868 = vmatpush1.bf16.msra.mxu0 %v2934_v10  ;;  %2347 = vmatpush3.bf16.msra.mxu1 %v2942_v11 }
 0x23e   :  { %869 = vmatprep.subr.bf16.mxu0 %v2948_v12  ;;  %2348 = vmatprep.subr.bf16.mxu1 %v2954_v13  ;;  %v638_v12 = vunpack.c.h.bf16 %v2091_v4  ;;  %v639_v4 = vunpack.c.l.bf16 %v2096_v48 }
 0x241   :  { %870 = vmatpush1.bf16.msra.mxu0 %v2959_v14  ;;  %2349 = vmatpush3.bf16.msra.mxu1 %v2954_v13 }
 0x242   :  { %871 = vmatprep.subr.bf16.mxu0 %v2965_v15  ;;  %2350 = vmatprep.subr.bf16.mxu1 %v2973_v16 }
 0x245   :  { %872 = vmatpush1.bf16.msra.mxu0 %v2979_v17  ;;  %2351 = vmatpush3.bf16.msra.mxu1 %v2973_v16  ;;  %v2095_v17 = vld [vmem:[%s3737_s0 + $0x84] sm:$0xff] }
 0x246   :  { %873 = vmatprep.subr.bf16.mxu0 %v2986_v18  ;;  %2352 = vmatprep.subr.bf16.mxu1 %v2992_v19  ;;  %v644_v2 = vunpack.c.h.bf16 %v2095_v17 }
 0x249   :  { %874 = vmatpush1.bf16.msra.mxu0 %v2998_v20  ;;  %2353 = vmatpush3.bf16.msra.mxu1 %v2992_v19 }
 0x24a   :  { %875 = vmatprep.subr.bf16.mxu0 %v3005_v21  ;;  %2354 = vmatprep.subr.bf16.mxu1 %v3011_v22 }
 0x24d   :  { %876 = vmatpush1.bf16.msra.mxu0 %v3017_v23  ;;  %2355 = vmatpush3.bf16.msra.mxu1 %v3011_v22  ;;  %v643_v22 = vunpack.c.l.bf16 %v2095_v17 }
 0x24e   :  { %2356 = vmatprep.subr.bf16.mxu1 %v3025_v24  ;;  %1074 = vmatprep.subr.bf16.mxu0 %v2887_v0  ;;  %v635_v0 = vunpack.c.h.bf16 %v2089_v3 }
 0x251   :  { %2357 = vmatpush3.bf16.msra.mxu1 %v3025_v24 }
 0x252   :  { %2358 = vmatprep.subr.bf16.mxu1 %v3033_v25 }
 0x255   :  { %2359 = vmatpush3.bf16.msra.mxu1 %v3033_v25 }
 0x256   :  { %2364 = vmatprep.subr.bf16.mxu1 %v2929_v9  ;;  %v2093_v9 = vld [vmem:[%s3737_s0 + $0x78] sm:$0xff] }
 0x257   :  { %v640_v19 = vunpack.c.l.bf16 %v2093_v9  ;;  %v641_v21 = vunpack.c.h.bf16 %v2093_v9 }
 0x303   :  { %v682_v7 = vpop.f32.mrb[16].mxu0 }
 0x304   :  { %v750_v8 = vadd.f32 %v682_v7, %v634_v5  ;;  %v684_v10 = vpop.f32.mrb[17].mxu0 }
 0x305   :  { %v686_v11 = vpop.f32.mrb[18].mxu0  ;;  %v778_v16 = vadd.f32 %v684_v10, %v635_v0 }
 0x306   :  { %v2097_v13 = vmul.f32 -1.442695, %v750_v8  ;;  %v751_v14 = vadd.f32 %v686_v11, %v637_v6  ;;  %v688_v15 = vpop.f32.mrb[19].mxu0 }
 0x307   :  { %v779_v20 = vadd.f32 %v688_v15, %v638_v12  ;;  %v2101_v23 = vmul.f32 -1.442695, %v778_v16  ;;  %v642_v12 = vunpack.c.h.bf16 %v2094_v43  ;;  %v645_v16 = vunpack.c.h.bf16 %v2096_v48  ;;  %v3300_v43 = vld [vmem:[%s3736_s1 + $0x4c] ss:$12 sps:$4 sm:$0xff]  }
 0x308   :  { %2586 = vpow2.f32 %v2097_v13  ;;  %v2098_v18 = vmul.f32 -1.442695, %v751_v14  ;;  %v3326_v48 = vld [vmem:[%s3736_s1 + $0x38] ss:$12 sps:$4 sm:$0xff]  }
 0x309   :  { %v2102_v44 = vmul.f32 -1.442695, %v779_v20 }
 0x30a   :  { %2588 = vpow2.f32 %v2098_v18 }
 0x30b   :  { %v692_v24 = vpop.f32.mrb[20].mxu0  ;;  %v2342_v25 = vpop.f32.mrb[8].mxu1  ;;  %2590 = vpow2.f32 %v2101_v23 }
 0x30c   :  { %v752_v52 = vadd.f32 %v692_v24, %v640_v19  ;;  %v694_v53 = vpop.f32.mrb[21].mxu0  ;;  %v735_v60 = vpop.f32.mrb[9].mxu1  ;;  %v808_v9 = vadd.f32 %v2342_v25, %v3092_v32 }
 0x30d   :  { %v696_v62 = vpop.f32.mrb[22].mxu0  ;;  %v2343_v63 = vpop.f32.mrb[10].mxu1  ;;  %v780_v57 = vadd.f32 %v694_v53, %v641_v21  ;;  %v806_v40 = vadd.f32 %v3092_v32, %v735_v60 }
 0x30e   :  { %v2099_v61 = vmul.f32 -1.442695, %v752_v52  ;;  %v753_v26 = vadd.f32 %v696_v62, %v643_v22  ;;  %v698_v27 = vpop.f32.mrb[23].mxu0  ;;  %v738_v28 = vpop.f32.mrb[11].mxu1  ;;  %v809_v17 = vadd.f32 %v2343_v63, %v3092_v32 }
 0x30f   :  { %v781_v30 = vadd.f32 %v698_v27, %v644_v2  ;;  %v2103_v31 = vmul.f32 -1.442695, %v780_v57  ;;  %v807_v5 = vadd.f32 %v3092_v32, %v738_v28 }
 0x310   :  { %2592 = vpow2.f32 %v2099_v61  ;;  %v2100_v29 = vmul.f32 -1.442695, %v753_v26 }
 0x311   :  { %2594 = vpow2.f32 %v2102_v44  ;;  %v2104_v36 = vmul.f32 -1.442695, %v781_v30 }
 0x312   :  { %v2587_v33 = vpop.eup %2586  ;;  %2596 = vpow2.f32 %v2100_v29 }
 0x313   :  { %v766_v41 = vadd.f32 1.0, %v2587_v33 }
 0x314   :  { %v2589_v34 = vpop.eup %2588 }
 0x315   :  { %2598 = vrcp.f32 %v766_v41  ;;  %v767_v49 = vadd.f32 1.0, %v2589_v34  ;;  %v2591_v35 = vpop.eup %2590 }
 0x316   :  { %2600 = vpow2.f32 %v2103_v31  ;;  %v794_v46 = vadd.f32 1.0, %v2591_v35  ;;  %v3274_v35 = vld [vmem:[%s3736_s1 + $0x18] ss:$12 sps:$4 sm:$0xff]  }
 0x317   :  { %2602 = vrcp.f32 %v767_v49 }
 0x318   :  { %2604 = vpow2.f32 %v2104_v36  ;;  %v3266_v36 = vld [vmem:[%s3736_s1 + $0x1c] ss:$12 sps:$4 sm:$0xff]  }
 0x31a   :  { %v2593_v37 = vpop.eup %2592 }
 0x31b   :  { %v2595_v38 = vpop.eup %2594  ;;  %v768_v42 = vadd.f32 1.0, %v2593_v37  ;;  %v3282_v37 = vld [vmem:[%s3736_s1 + $0x34] ss:$12 sps:$4 sm:$0xff]  }
 0x31c   :  { %v2597_v45 = vpop.eup %2596  ;;  %v795_v50 = vadd.f32 1.0, %v2595_v38  ;;  %v3288_v38 = vld [vmem:[%s3736_s1 + $0x30] ss:$12 sps:$4 sm:$0xff]  }
 0x31d   :  { %2606 = vrcp.f32 %v768_v42  ;;  %v769_v39 = vadd.f32 1.0, %v2597_v45  ;;  %v3294_v42 = vld [vmem:[%s3736_s1 + $0x8] ss:$12 sps:$4 sm:$0xff]   ;;  %v3306_v45 = vld [vmem:[%s3736_s1 + $0x20] ss:$12 sps:$4 sm:$0xff]  }
 0x31f   :  { %v2599_v54 = vpop.eup %2598  ;;  %2608 = vrcp.f32 %v769_v39  ;;  %v3320_v39 = vld [vmem:[%s3736_s1 + $0x64] ss:$12 sps:$4 sm:$0xff]  }
 0x320   :  { %v2601_v59 = vpop.eup %2600  ;;  %2610 = vrcp.f32 %v794_v46  ;;  %v810_v3 = vmul.f32 %v2599_v54, %v806_v40  ;;  %v3313_v46 = vld [vmem:[%s3736_s1 + $0x48] ss:$12 sps:$4 sm:$0xff]   ;;  %v3345_v40 = vld [vmem:[%s3736_s1 + $0x50] ss:$12 sps:$4 sm:$0xff]   ;;  %v3351_v54 = vld [vmem:[%s3736_s1 + $0x78] ss:$12 sps:$4 sm:$0xff]  }
 0x321   :  { %v2603_v6 = vpop.eup %2602  ;;  %2612 = vrcp.f32 %v795_v50  ;;  %v796_v10 = vadd.f32 1.0, %v2601_v59  ;;  %v3332_v50 = vld [vmem:[%s3736_s1 + $0x60] ss:$12 sps:$4 sm:$0xff]  }
 0x322   :  { %v814_v7 = vadd.f32 %v810_v3, %v636_v51  ;;  %v811_v0 = vmul.f32 %v2603_v6, %v807_v5  ;;  %v2605_v8 = vpop.eup %2604  ;;  %v3339_v51 = vld [vmem:[%s3736_s1 + $0x7c] ss:$12 sps:$4 sm:$0xff]   ;;  %v3358_v59 = vld [vmem:[%s3736_s1 + $0x94] ss:$12 sps:$4 sm:$0xff]   ;;  %v3377_v5 = vld [vmem:[%s3736_s1 + $0xac] ss:$12 sps:$4 sm:$0xff]  }
 0x323   :  { %v797_v13 = vadd.f32 1.0, %v2605_v8  ;;  %v3364_v3 = vld [vmem:[%s3736_s1 + $0x68] ss:$12 sps:$4 sm:$0xff]   ;;  %v3383_v6 = vld [vmem:[%s3736_s1 + $0x80] ss:$12 sps:$4 sm:$0xff]  }
 0x324   :  { %2614 = vtanh.f32 %v814_v7  ;;  %v815_v11 = vadd.f32 %v811_v0, %v639_v4  ;;  %v3370_v4 = vld [vmem:[%s3736_s1 + $0x90] ss:$12 sps:$4 sm:$0xff]   ;;  %v3389_v7 = vld [vmem:[%s3736_s1 + $0xa8] ss:$12 sps:$4 sm:$0xff]   ;;  %v3396_v0 = vld [vmem:[%s3736_s1 + $0x98] ss:$12 sps:$4 sm:$0xff]  }
 0x325   :  { %v3402_v8 = vld [vmem:[%s3736_s1 + $0x4] ss:$12 sps:$4 sm:$0xff]  }
 0x326   :  { %2616 = vtanh.f32 %v815_v11  ;;  %v2105_v11 = vld [vmem:[%s3737_s0 + $0x90] sm:$0xff] }
 0x327   :  { %v2607_v14 = vpop.eup %2606  ;;  %2618 = vrcp.f32 %v796_v10  ;;  %v3409_v10 = vld [vmem:[%s3736_s1 + $0xb0] ss:$12 sps:$4 sm:$0xff]  }
 0x328   :  { %v812_v15 = vmul.f32 %v2607_v14, %v808_v9  ;;  %2620 = vrcp.f32 %v797_v13  ;;  %v847_v9 = vunpack.c.l.bf16 %v2105_v11 }
 0x329   :  { %v2609_v18 = vpop.eup %2608 }
 0x32a   :  { %v2611_v19 = vpop.eup %2610  ;;  %v816_v20 = vadd.f32 %v812_v15, %v642_v12  ;;  %v813_v21 = vmul.f32 %v2609_v18, %v809_v17  ;;  %v2107_v12 = vld [vmem:[%s3737_s0 + $0x9c] sm:$0xff]  ;;  %v848_v15 = vunpack.c.h.bf16 %v2105_v11 }
 0x32b   :  { %v2613_v22 = vpop.eup %2612  ;;  %v822_v24 = vsub.f32 1.0, %v2611_v19  ;;  %v830_v25 = vmul.f32 %v2611_v19, %v3174_v47  ;;  %v850_v13 = vunpack.c.l.bf16 %v2107_v12  ;;  %v851_v19 = vunpack.c.h.bf16 %v2107_v12 }
 0x32c   :  { %2622 = vtanh.f32 %v816_v20  ;;  %v817_v23 = vadd.f32 %v813_v21, %v645_v16  ;;  %v823_v53 = vsub.f32 1.0, %v2613_v22  ;;  %v831_v62 = vmul.f32 %v2613_v22, %v3176_v56  ;;  %v3257_v56 = vld [vmem:[%s3736_s1] ss:$12 sps:$4 sm:$0xff]  }
 0x32d   :  { %v2109_v20 = vld [vmem:[%s3737_s0 + $0xa8] sm:$0xff] }
 0x32e   :  { %v2615_v52 = vpop.eup %2614  ;;  %2624 = vtanh.f32 %v817_v23 }
 0x32f   :  { %v826_v60 = vmul.f32 %v2615_v52, %v822_v24  ;;  %v2111_v52 = vld [vmem:[%s3737_s0 + $0xb4] sm:$0xff] }
 0x330   :  { %v2617_v44 = vpop.eup %2616 }
 0x331   :  { %v827_v2 = vmul.f32 %v2617_v44, %v823_v53  ;;  %v3246_v63 = vadd.f32 %v830_v25, %v826_v60  ;;  %v2619_v61 = vpop.eup %2618  ;;  %v853_v53 = vunpack.c.l.bf16 %v2109_v20  ;;  %v854_v44 = vunpack.c.h.bf16 %v2109_v20 }
 0x332   :  { %v2621_v26 = vpop.eup %2620  ;;  %v824_v28 = vsub.f32 1.0, %v2619_v61  ;;  %v832_v33 = vmul.f32 %v2619_v61, %v3184_v55 }
 0x333   :  { %v3248_v57 = vadd.f32 %v831_v62, %v827_v2  ;;  %v825_v47 = vsub.f32 1.0, %v2621_v26  ;;  %v833_v34 = vmul.f32 %v2621_v26, %v3187_v58  ;;  %v856_v62 = vunpack.c.l.bf16 %v2111_v52 }
 0x335   :  { %v859_v27 = vpack.c.bf16 %v3248_v57, %v3246_v63 }
 0x336   :  { %v2623_v29 = vpop.eup %2622 }
 0x337   :  { %894 = vmatmul.mubr.bf16.vlgmr.msra.gmra.mrb[24].mxu0 %v859_v27  ;;  %2360 = vmatprep.mubr.bf16.mxu1 %v859_v27  ;;  %v828_v30 = vmul.f32 %v2623_v29, %v824_v28 }
 0x338   :  { %v2625_v31 = vpop.eup %2624  ;;  %903 = vmatprep.mubr.bf16.mxu0 %v2852_v1  ;;  %1075 = vmatpush1.bf16.msra.mxu0 %v3257_v56 }
 0x339   :  { %v829_v41 = vmul.f32 %v2625_v31, %v825_v47  ;;  %v3261_v49 = vadd.f32 %v832_v33, %v828_v30  ;;  %1076 = vmatprep.subr.bf16.mxu0 %v3266_v36  ;;  %v857_v31 = vunpack.c.h.bf16 %v2111_v52 }
 0x33b   :  { %v3269_v55 = vadd.f32 %v833_v34, %v829_v41 }
 0x33c   :  { %1077 = vmatpush1.bf16.msra.mxu0 %v3274_v35 }
 0x33d   :  { %v860_v58 = vpack.c.bf16 %v3269_v55, %v3261_v49  ;;  %1078 = vmatprep.subr.bf16.mxu0 %v3282_v37 }
 0x33f   :  { %904 = vmatmul.mubr.bf16.gmra.mrb[28].mxu0 %v860_v58  ;;  %2361 = vmatmul.mubr.bf16.vlgmr.msra.gmra.mrb[12].mxu1 %v860_v58 }
 0x340   :  { %1079 = vmatpush1.bf16.msra.mxu0 %v3288_v38  ;;  %2365 = vmatpush3.bf16.msra.mxu1 %v3294_v42 }
 0x341   :  { %1080 = vmatprep.subr.bf16.mxu0 %v3300_v43  ;;  %2366 = vmatprep.subr.bf16.mxu1 %v3306_v45 }
 0x342   :  { %1106 = vmatprep.mubr.bf16.mxu0 %v2852_v1 }
 0x344   :  { %1081 = vmatpush1.bf16.msra.mxu0 %v3313_v46  ;;  %2367 = vmatpush3.bf16.msra.mxu1 %v3306_v45 }
 0x345   :  { %1082 = vmatprep.subr.bf16.mxu0 %v3320_v39  ;;  %2368 = vmatprep.subr.bf16.mxu1 %v3326_v48 }
 0x348   :  { %1083 = vmatpush1.bf16.msra.mxu0 %v3332_v50  ;;  %2369 = vmatpush3.bf16.msra.mxu1 %v3326_v48 }
 0x349   :  { %1084 = vmatprep.subr.bf16.mxu0 %v3339_v51  ;;  %2370 = vmatprep.subr.bf16.mxu1 %v3345_v40 }
 0x34c   :  { %1085 = vmatpush1.bf16.msra.mxu0 %v3351_v54  ;;  %2371 = vmatpush3.bf16.msra.mxu1 %v3345_v40 }
 0x34d   :  { %1086 = vmatprep.subr.bf16.mxu0 %v3358_v59  ;;  %2372 = vmatprep.subr.bf16.mxu1 %v3364_v3 }
 0x350   :  { %1087 = vmatpush1.bf16.msra.mxu0 %v3370_v4  ;;  %2373 = vmatpush3.bf16.msra.mxu1 %v3364_v3 }
 0x351   :  { %1088 = vmatprep.subr.bf16.mxu0 %v3377_v5  ;;  %2374 = vmatprep.subr.bf16.mxu1 %v3383_v6 }
 0x354   :  { %1089 = vmatpush1.bf16.msra.mxu0 %v3389_v7  ;;  %2375 = vmatpush3.bf16.msra.mxu1 %v3383_v6 }
 0x355   :  { %2376 = vmatprep.subr.bf16.mxu1 %v3396_v0  ;;  %1287 = vmatprep.subr.bf16.mxu0 %v3402_v8 }
 0x358   :  { %2377 = vmatpush3.bf16.msra.mxu1 %v3396_v0 }
 0x359   :  { %2378 = vmatprep.subr.bf16.mxu1 %v3409_v10 }
 0x35c   :  { %2379 = vmatpush3.bf16.msra.mxu1 %v3409_v10 }
 0x35d   :  { %2384 = vmatprep.subr.bf16.mxu1 %v3294_v42 }
 0x40a   :  { %v895_v14 = vpop.f32.mrb[24].mxu0 }
 0x40b   :  { %v963_v16 = vadd.f32 %v895_v14, %v847_v9  ;;  %v897_v17 = vpop.f32.mrb[25].mxu0 }
 0x40c   :  { %v899_v18 = vpop.f32.mrb[26].mxu0  ;;  %v991_v24 = vadd.f32 %v897_v17, %v848_v15 }
 0x40d   :  { %v2113_v21 = vmul.f32 -1.442695, %v963_v16  ;;  %v964_v22 = vadd.f32 %v899_v18, %v850_v13  ;;  %v901_v23 = vpop.f32.mrb[27].mxu0 }
 0x40e   :  { %v992_v60 = vadd.f32 %v901_v23, %v851_v19  ;;  %v2117_v2 = vmul.f32 -1.442695, %v991_v24  ;;  %v2110_v24 = vld [vmem:[%s3737_s0 + $0x98] ss:$24 sps:$4 sm:$0xff]  }
 0x40f   :  { %2626 = vpow2.f32 %v2113_v21  ;;  %v2114_v25 = vmul.f32 -1.442695, %v964_v22 }
 0x410   :  { %v2118_v47 = vmul.f32 -1.442695, %v992_v60  ;;  %v2112_v60 = vld [vmem:[%s3737_s0 + $0xa4] ss:$24 sps:$4 sm:$0xff]  }
 0x411   :  { %2628 = vpow2.f32 %v2114_v25 }
 0x412   :  { %v905_v61 = vpop.f32.mrb[28].mxu0  ;;  %v2362_v26 = vpop.f32.mrb[12].mxu1  ;;  %2630 = vpow2.f32 %v2117_v2 }
 0x413   :  { %v965_v27 = vadd.f32 %v905_v61, %v853_v53  ;;  %v907_v28 = vpop.f32.mrb[29].mxu0  ;;  %v948_v29 = vpop.f32.mrb[13].mxu1 }
 0x414   :  { %v909_v30 = vpop.f32.mrb[30].mxu0  ;;  %v2363_v33 = vpop.f32.mrb[14].mxu1  ;;  %v993_v34 = vadd.f32 %v907_v28, %v854_v44  ;;  %v1019_v2 = vadd.f32 %v3092_v32, %v948_v29  ;;  %v3437_v29 = vld [vmem:[%s3738_s2] ss:$0 sm:$0xff] }
 0x415   :  { %v2115_v41 = vmul.f32 -1.442695, %v965_v27  ;;  %v966_v58 = vadd.f32 %v909_v30, %v856_v62  ;;  %v911_v11 = vpop.f32.mrb[31].mxu0  ;;  %v951_v12 = vpop.f32.mrb[15].mxu1  ;;  %v849_v62 = vunpack.c.l.bf16 %v2110_v24 }
 0x416   :  { %v994_v13 = vadd.f32 %v911_v11, %v857_v31  ;;  %v2119_v15 = vmul.f32 -1.442695, %v993_v34  ;;  %v1020_v30 = vadd.f32 %v3092_v32, %v951_v12  ;;  %v858_v12 = vunpack.c.h.bf16 %v2112_v60 }
 0x417   :  { %2632 = vpow2.f32 %v2115_v41  ;;  %v2116_v9 = vmul.f32 -1.442695, %v966_v58 }
 0x418   :  { %2634 = vpow2.f32 %v2118_v47  ;;  %v2120_v19 = vmul.f32 -1.442695, %v994_v13  ;;  %v852_v47 = vunpack.c.l.bf16 %v2112_v60  ;;  %v855_v13 = vunpack.c.h.bf16 %v2110_v24 }
 0x419   :  { %v2627_v14 = vpop.eup %2626  ;;  %2636 = vpow2.f32 %v2116_v9 }
 0x41a   :  { %v979_v16 = vadd.f32 1.0, %v2627_v14  ;;  %v1021_v14 = vadd.f32 %v3437_v29, %v2362_v26 }
 0x41b   :  { %v2629_v17 = vpop.eup %2628 }
 0x41c   :  { %2638 = vrcp.f32 %v979_v16  ;;  %v980_v18 = vadd.f32 1.0, %v2629_v17  ;;  %v2631_v20 = vpop.eup %2630  ;;  %v1022_v17 = vadd.f32 %v3437_v29, %v2363_v33 }
 0x41d   :  { %2640 = vpow2.f32 %v2119_v15  ;;  %v1007_v25 = vadd.f32 1.0, %v2631_v20 }
 0x41e   :  { %2642 = vrcp.f32 %v980_v18 }
 0x41f   :  { %2644 = vpow2.f32 %v2120_v19 }
 0x421   :  { %v2633_v21 = vpop.eup %2632 }
 0x422   :  { %v2635_v22 = vpop.eup %2634  ;;  %v981_v23 = vadd.f32 1.0, %v2633_v21 }
 0x423   :  { %v2637_v52 = vpop.eup %2636  ;;  %v1008_v44 = vadd.f32 1.0, %v2635_v22 }
 0x424   :  { %2646 = vrcp.f32 %v981_v23  ;;  %v982_v53 = vadd.f32 1.0, %v2637_v52 }
 0x426   :  { %v2639_v61 = vpop.eup %2638  ;;  %2648 = vrcp.f32 %v982_v53 }
 0x427   :  { %v2641_v27 = vpop.eup %2640  ;;  %2650 = vrcp.f32 %v1007_v25  ;;  %v1023_v28 = vmul.f32 %v2639_v61, %v1019_v2 }
 0x428   :  { %v2643_v31 = vpop.eup %2642  ;;  %2652 = vrcp.f32 %v1008_v44  ;;  %v1009_v11 = vadd.f32 1.0, %v2641_v27 }
 0x429   :  { %v1027_v41 = vadd.f32 %v1023_v28, %v849_v62  ;;  %v1024_v34 = vmul.f32 %v2643_v31, %v1020_v30  ;;  %v2645_v58 = vpop.eup %2644 }
 0x42a   :  { %v1010_v15 = vadd.f32 1.0, %v2645_v58 }
 0x42b   :  { %2654 = vtanh.f32 %v1027_v41  ;;  %v1028_v9 = vadd.f32 %v1024_v34, %v852_v47 }
 0x42d   :  { %2656 = vtanh.f32 %v1028_v9 }
 0x42e   :  { %v2647_v16 = vpop.eup %2646  ;;  %2658 = vrcp.f32 %v1009_v11 }
 0x42f   :  { %v1025_v32 = vmul.f32 %v2647_v16, %v1021_v14  ;;  %2660 = vrcp.f32 %v1010_v15 }
 0x430   :  { %v2649_v18 = vpop.eup %2648 }
 0x431   :  { %v2651_v19 = vpop.eup %2650  ;;  %v1029_v20 = vadd.f32 %v1025_v32, %v855_v13  ;;  %v1026_v21 = vmul.f32 %v2649_v18, %v1022_v17 }
 0x432   :  { %v2653_v22 = vpop.eup %2652  ;;  %v1035_v24 = vsub.f32 1.0, %v2651_v19  ;;  %v1043_v26 = vmul.f32 %v2651_v19, %v3246_v63 }
 0x433   :  { %2662 = vtanh.f32 %v1029_v20  ;;  %v1030_v23 = vadd.f32 %v1026_v21, %v858_v12  ;;  %v1036_v25 = vsub.f32 1.0, %v2653_v22  ;;  %v1044_v60 = vmul.f32 %v2653_v22, %v3248_v57  ;;  %v2125_v20 = vld [vmem:[%s3737_s0 + $0xd8] sm:$0xff] }
 0x435   :  { %v2655_v52 = vpop.eup %2654  ;;  %2664 = vtanh.f32 %v1030_v23 }
 0x436   :  { %v1039_v53 = vmul.f32 %v2655_v52, %v1035_v24  ;;  %v2127_v52 = vld [vmem:[%s3737_s0 + $0xe4] sm:$0xff] }
 0x437   :  { %v2657_v44 = vpop.eup %2656 }
 0x438   :  { %v1040_v62 = vmul.f32 %v2657_v44, %v1036_v25  ;;  %v3443_v33 = vadd.f32 %v1043_v26, %v1039_v53  ;;  %v2659_v2 = vpop.eup %2658  ;;  %v1066_v25 = vunpack.c.l.bf16 %v2125_v20  ;;  %v1067_v44 = vunpack.c.h.bf16 %v2125_v20 }
 0x439   :  { %v2661_v27 = vpop.eup %2660  ;;  %v1037_v47 = vsub.f32 1.0, %v2659_v2  ;;  %v1045_v41 = vmul.f32 %v2659_v2, %v3261_v49  ;;  %v2121_v49 = vld [vmem:[%s3737_s0 + $0xc0] sm:$0xff] }
 0x43a   :  { %v3445_v61 = vadd.f32 %v1044_v60, %v1040_v62  ;;  %v1038_v63 = vsub.f32 1.0, %v2661_v27  ;;  %v1046_v58 = vmul.f32 %v2661_v27, %v3269_v55  ;;  %v2123_v55 = vld [vmem:[%s3737_s0 + $0xcc] sm:$0xff]  ;;  %v1060_v14 = vunpack.c.l.bf16 %v2121_v49 }
 0x43b   :  { %v1063_v15 = vunpack.c.l.bf16 %v2123_v55  ;;  %v1061_v32 = vunpack.c.h.bf16 %v2121_v49  ;;  %v1064_v19 = vunpack.c.h.bf16 %v2123_v55  ;;  %v1069_v60 = vunpack.c.l.bf16 %v2127_v52 }
 0x43c   :  { %v1072_v28 = vpack.c.bf16 %v3445_v61, %v3443_v33 }
 0x43d   :  { %v2663_v30 = vpop.eup %2662 }
 0x43e   :  { %1107 = vmatmul.mubr.bf16.vlgmr.msra.gmra.mrb[32].mxu0 %v1072_v28  ;;  %2380 = vmatprep.mubr.bf16.mxu1 %v1072_v28  ;;  %v1041_v31 = vmul.f32 %v2663_v30, %v1037_v47 }
 0x43f   :  { %v2665_v34 = vpop.eup %2664  ;;  %1116 = vmatprep.mubr.bf16.mxu0 %v2852_v1  ;;  %1288 = vmatpush1.bf16.msra.mxu0 %v3257_v56 }
 0x440   :  { %v1042_v57 = vmul.f32 %v2665_v34, %v1038_v63  ;;  %v3453_v11 = vadd.f32 %v1045_v41, %v1041_v31  ;;  %1289 = vmatprep.subr.bf16.mxu0 %v3266_v36  ;;  %v1070_v34 = vunpack.c.h.bf16 %v2127_v52 }
 0x442   :  { %v3456_v9 = vadd.f32 %v1046_v58, %v1042_v57 }
 0x443   :  { %1290 = vmatpush1.bf16.msra.mxu0 %v3274_v35 }
 0x444   :  { %v1073_v13 = vpack.c.bf16 %v3456_v9, %v3453_v11  ;;  %1291 = vmatprep.subr.bf16.mxu0 %v3282_v37 }
 0x446   :  { %1117 = vmatmul.mubr.bf16.gmra.mrb[36].mxu0 %v1073_v13  ;;  %2381 = vmatmul.mubr.bf16.vlgmr.msra.gmra.mrb[16].mxu1 %v1073_v13 }
 0x447   :  { %1292 = vmatpush1.bf16.msra.mxu0 %v3288_v38  ;;  %2385 = vmatpush3.bf16.msra.mxu1 %v3294_v42 }
 0x448   :  { %1293 = vmatprep.subr.bf16.mxu0 %v3300_v43  ;;  %2386 = vmatprep.subr.bf16.mxu1 %v3306_v45 }
 0x449   :  { %1319 = vmatprep.mubr.bf16.mxu0 %v2852_v1 }
 0x44b   :  { %1294 = vmatpush1.bf16.msra.mxu0 %v3313_v46  ;;  %2387 = vmatpush3.bf16.msra.mxu1 %v3306_v45 }
 0x44c   :  { %1295 = vmatprep.subr.bf16.mxu0 %v3320_v39  ;;  %2388 = vmatprep.subr.bf16.mxu1 %v3326_v48 }
 0x44f   :  { %1296 = vmatpush1.bf16.msra.mxu0 %v3332_v50  ;;  %2389 = vmatpush3.bf16.msra.mxu1 %v3326_v48 }
 0x450   :  { %1297 = vmatprep.subr.bf16.mxu0 %v3339_v51  ;;  %2390 = vmatprep.subr.bf16.mxu1 %v3345_v40 }
 0x453   :  { %1298 = vmatpush1.bf16.msra.mxu0 %v3351_v54  ;;  %2391 = vmatpush3.bf16.msra.mxu1 %v3345_v40 }
 0x454   :  { %1299 = vmatprep.subr.bf16.mxu0 %v3358_v59  ;;  %2392 = vmatprep.subr.bf16.mxu1 %v3364_v3 }
 0x457   :  { %1300 = vmatpush1.bf16.msra.mxu0 %v3370_v4  ;;  %2393 = vmatpush3.bf16.msra.mxu1 %v3364_v3 }
 0x458   :  { %1301 = vmatprep.subr.bf16.mxu0 %v3377_v5  ;;  %2394 = vmatprep.subr.bf16.mxu1 %v3383_v6 }
 0x45b   :  { %1302 = vmatpush1.bf16.msra.mxu0 %v3389_v7  ;;  %2395 = vmatpush3.bf16.msra.mxu1 %v3383_v6 }
 0x45c   :  { %2396 = vmatprep.subr.bf16.mxu1 %v3396_v0  ;;  %1500 = vmatprep.subr.bf16.mxu0 %v3402_v8 }
 0x45f   :  { %2397 = vmatpush3.bf16.msra.mxu1 %v3396_v0 }
 0x460   :  { %2398 = vmatprep.subr.bf16.mxu1 %v3409_v10 }
 0x463   :  { %2399 = vmatpush3.bf16.msra.mxu1 %v3409_v10 }
 0x464   :  { %2404 = vmatprep.subr.bf16.mxu1 %v3294_v42 }
 0x511   :  { %v1108_v16 = vpop.f32.mrb[32].mxu0 }
 0x512   :  { %v1176_v12 = vadd.f32 %v1108_v16, %v1060_v14  ;;  %v1110_v17 = vpop.f32.mrb[33].mxu0 }
 0x513   :  { %v1112_v18 = vpop.f32.mrb[34].mxu0  ;;  %v1204_v24 = vadd.f32 %v1110_v17, %v1061_v32 }
 0x514   :  { %v2129_v21 = vmul.f32 -1.442695, %v1176_v12  ;;  %v1177_v22 = vadd.f32 %v1112_v18, %v1063_v15  ;;  %v1114_v23 = vpop.f32.mrb[35].mxu0 }
 0x515   :  { %v1205_v53 = vadd.f32 %v1114_v23, %v1064_v19  ;;  %v2133_v62 = vmul.f32 -1.442695, %v1204_v24  ;;  %v2126_v24 = vld [vmem:[%s3737_s0 + $0xc8] ss:$24 sps:$4 sm:$0xff]  }
 0x516   :  { %2666 = vpow2.f32 %v2129_v21  ;;  %v2130_v26 = vmul.f32 -1.442695, %v1177_v22 }
 0x517   :  { %v2134_v63 = vmul.f32 -1.442695, %v1205_v53  ;;  %v2128_v53 = vld [vmem:[%s3737_s0 + $0xd4] ss:$24 sps:$4 sm:$0xff]  }
 0x518   :  { %2668 = vpow2.f32 %v2130_v26 }
 0x519   :  { %v1118_v2 = vpop.f32.mrb[36].mxu0  ;;  %v2382_v27 = vpop.f32.mrb[16].mxu1  ;;  %2670 = vpow2.f32 %v2133_v62 }
 0x51a   :  { %v1178_v28 = vadd.f32 %v1118_v2, %v1066_v25  ;;  %v1120_v47 = vpop.f32.mrb[37].mxu0  ;;  %v1161_v30 = vpop.f32.mrb[17].mxu1 }
 0x51b   :  { %v1122_v31 = vpop.f32.mrb[38].mxu0  ;;  %v2383_v41 = vpop.f32.mrb[18].mxu1  ;;  %v1206_v58 = vadd.f32 %v1120_v47, %v1067_v44  ;;  %v1232_v62 = vadd.f32 %v3437_v29, %v1161_v30 }
 0x51c   :  { %v2131_v57 = vmul.f32 -1.442695, %v1178_v28  ;;  %v1179_v13 = vadd.f32 %v1122_v31, %v1069_v60  ;;  %v1124_v49 = vpop.f32.mrb[39].mxu0  ;;  %v1164_v55 = vpop.f32.mrb[19].mxu1  ;;  %v1062_v60 = vunpack.c.l.bf16 %v2126_v24 }
 0x51d   :  { %v1207_v15 = vadd.f32 %v1124_v49, %v1070_v34  ;;  %v2135_v32 = vmul.f32 -1.442695, %v1206_v58  ;;  %v1233_v31 = vadd.f32 %v3437_v29, %v1164_v55 }
 0x51e   :  { %2672 = vpow2.f32 %v2131_v57  ;;  %v2132_v14 = vmul.f32 -1.442695, %v1179_v13 }
 0x51f   :  { %2674 = vpow2.f32 %v2134_v63  ;;  %v2136_v19 = vmul.f32 -1.442695, %v1207_v15  ;;  %v1065_v63 = vunpack.c.l.bf16 %v2128_v53  ;;  %v1068_v15 = vunpack.c.h.bf16 %v2126_v24 }
 0x520   :  { %v2667_v16 = vpop.eup %2666  ;;  %2676 = vpow2.f32 %v2132_v14 }
 0x521   :  { %v1192_v12 = vadd.f32 1.0, %v2667_v16  ;;  %v1234_v16 = vadd.f32 %v3437_v29, %v2382_v27 }
 0x522   :  { %v2669_v17 = vpop.eup %2668 }
 0x523   :  { %2678 = vrcp.f32 %v1192_v12  ;;  %v1193_v18 = vadd.f32 1.0, %v2669_v17  ;;  %v2671_v20 = vpop.eup %2670  ;;  %v1071_v17 = vunpack.c.h.bf16 %v2128_v53 }
 0x524   :  { %2680 = vpow2.f32 %v2135_v32  ;;  %v1220_v26 = vadd.f32 1.0, %v2671_v20 }
 0x525   :  { %2682 = vrcp.f32 %v1193_v18  ;;  %v1235_v18 = vadd.f32 %v3437_v29, %v2383_v41 }
 0x526   :  { %2684 = vpow2.f32 %v2136_v19 }
 0x528   :  { %v2673_v21 = vpop.eup %2672 }
 0x529   :  { %v2675_v22 = vpop.eup %2674  ;;  %v1194_v23 = vadd.f32 1.0, %v2673_v21 }
 0x52a   :  { %v2677_v52 = vpop.eup %2676  ;;  %v1221_v44 = vadd.f32 1.0, %v2675_v22 }
 0x52b   :  { %2686 = vrcp.f32 %v1194_v23  ;;  %v1195_v25 = vadd.f32 1.0, %v2677_v52 }
 0x52d   :  { %v2679_v2 = vpop.eup %2678  ;;  %2688 = vrcp.f32 %v1195_v25 }
 0x52e   :  { %v2681_v28 = vpop.eup %2680  ;;  %2690 = vrcp.f32 %v1220_v26  ;;  %v1236_v47 = vmul.f32 %v2679_v2, %v1232_v62 }
 0x52f   :  { %v2683_v34 = vpop.eup %2682  ;;  %2692 = vrcp.f32 %v1221_v44  ;;  %v1222_v49 = vadd.f32 1.0, %v2681_v28 }
 0x530   :  { %v1240_v57 = vadd.f32 %v1236_v47, %v1062_v60  ;;  %v1237_v58 = vmul.f32 %v2683_v34, %v1233_v31  ;;  %v2685_v13 = vpop.eup %2684 }
 0x531   :  { %v1223_v30 = vadd.f32 1.0, %v2685_v13 }
 0x532   :  { %2694 = vtanh.f32 %v1240_v57  ;;  %v1241_v14 = vadd.f32 %v1237_v58, %v1065_v63 }
 0x534   :  { %2696 = vtanh.f32 %v1241_v14 }
 0x535   :  { %v2687_v32 = vpop.eup %2686  ;;  %2698 = vrcp.f32 %v1222_v49 }
 0x536   :  { %v1238_v12 = vmul.f32 %v2687_v32, %v1234_v16  ;;  %2700 = vrcp.f32 %v1223_v30 }
 0x537   :  { %v2689_v55 = vpop.eup %2688 }
 0x538   :  { %v2691_v19 = vpop.eup %2690  ;;  %v1242_v20 = vadd.f32 %v1238_v12, %v1068_v15  ;;  %v1239_v21 = vmul.f32 %v2689_v55, %v1235_v18 }
 0x539   :  { %v2693_v22 = vpop.eup %2692  ;;  %v1248_v52 = vsub.f32 1.0, %v2691_v19  ;;  %v1256_v27 = vmul.f32 %v2691_v19, %v3443_v33  ;;  %v2141_v19 = vld [vmem:[%s3737_s0 + $0x108] sm:$0xff] }
 0x53a   :  { %2702 = vtanh.f32 %v1242_v20  ;;  %v1243_v23 = vadd.f32 %v1239_v21, %v1071_v17  ;;  %v1249_v26 = vsub.f32 1.0, %v2693_v22  ;;  %v1257_v53 = vmul.f32 %v2693_v22, %v3445_v61 }
 0x53c   :  { %v2695_v24 = vpop.eup %2694  ;;  %2704 = vtanh.f32 %v1243_v23 }
 0x53d   :  { %v1252_v25 = vmul.f32 %v2695_v24, %v1248_v52  ;;  %v2143_v52 = vld [vmem:[%s3737_s0 + $0x114] sm:$0xff] }
 0x53e   :  { %v2697_v44 = vpop.eup %2696 }
 0x53f   :  { %v1253_v60 = vmul.f32 %v2697_v44, %v1249_v26  ;;  %v3515_v41 = vadd.f32 %v1256_v27, %v1252_v25  ;;  %v2699_v62 = vpop.eup %2698  ;;  %v1279_v27 = vunpack.c.l.bf16 %v2141_v19  ;;  %v1280_v25 = vunpack.c.h.bf16 %v2141_v19 }
 0x540   :  { %v2701_v28 = vpop.eup %2700  ;;  %v1250_v63 = vsub.f32 1.0, %v2699_v62  ;;  %v1258_v57 = vmul.f32 %v2699_v62, %v3453_v11  ;;  %v2137_v11 = vld [vmem:[%s3737_s0 + $0xf0] sm:$0xff]  ;;  %v1282_v44 = vunpack.c.l.bf16 %v2143_v52 }
 0x541   :  { %v3517_v2 = vadd.f32 %v1257_v53, %v1253_v60  ;;  %v1251_v33 = vsub.f32 1.0, %v2701_v28  ;;  %v1259_v13 = vmul.f32 %v2701_v28, %v3456_v9  ;;  %v2139_v9 = vld [vmem:[%s3737_s0 + $0xfc] sm:$0xff]  ;;  %v1273_v16 = vunpack.c.l.bf16 %v2137_v11 }
 0x542   :  { %v1276_v30 = vunpack.c.l.bf16 %v2139_v9  ;;  %v1277_v55 = vunpack.c.h.bf16 %v2139_v9 }
 0x543   :  { %v1285_v47 = vpack.c.bf16 %v3517_v2, %v3515_v41 }
 0x544   :  { %v2703_v31 = vpop.eup %2702 }
 0x545   :  { %1320 = vmatmul.mubr.bf16.vlgmr.msra.gmra.mrb[40].mxu0 %v1285_v47  ;;  %2400 = vmatprep.mubr.bf16.mxu1 %v1285_v47  ;;  %v1254_v34 = vmul.f32 %v2703_v31, %v1250_v63 }
 0x546   :  { %v2705_v58 = vpop.eup %2704  ;;  %1329 = vmatprep.mubr.bf16.mxu0 %v2852_v1  ;;  %1501 = vmatpush1.bf16.msra.mxu0 %v3257_v56 }
 0x547   :  { %v1255_v61 = vmul.f32 %v2705_v58, %v1251_v33  ;;  %v3525_v49 = vadd.f32 %v1258_v57, %v1254_v34  ;;  %1502 = vmatprep.subr.bf16.mxu0 %v3266_v36  ;;  %v1283_v57 = vunpack.c.h.bf16 %v2143_v52 }
 0x549   :  { %v3528_v14 = vadd.f32 %v1259_v13, %v1255_v61 }
 0x54a   :  { %1503 = vmatpush1.bf16.msra.mxu0 %v3274_v35 }
 0x54b   :  { %v1286_v15 = vpack.c.bf16 %v3528_v14, %v3525_v49  ;;  %1504 = vmatprep.subr.bf16.mxu0 %v3282_v37 }
 0x54d   :  { %1330 = vmatmul.mubr.bf16.gmra.mrb[44].mxu0 %v1286_v15  ;;  %2401 = vmatmul.mubr.bf16.vlgmr.msra.gmra.mrb[20].mxu1 %v1286_v15 }
 0x54e   :  { %1505 = vmatpush1.bf16.msra.mxu0 %v3288_v38  ;;  %2405 = vmatpush3.bf16.msra.mxu1 %v3294_v42 }
 0x54f   :  { %1506 = vmatprep.subr.bf16.mxu0 %v3300_v43  ;;  %2406 = vmatprep.subr.bf16.mxu1 %v3306_v45 }
 0x550   :  { %1532 = vmatprep.mubr.bf16.mxu0 %v2852_v1 }
 0x552   :  { %1507 = vmatpush1.bf16.msra.mxu0 %v3313_v46  ;;  %2407 = vmatpush3.bf16.msra.mxu1 %v3306_v45 }
 0x553   :  { %1508 = vmatprep.subr.bf16.mxu0 %v3320_v39  ;;  %2408 = vmatprep.subr.bf16.mxu1 %v3326_v48 }
 0x556   :  { %1509 = vmatpush1.bf16.msra.mxu0 %v3332_v50  ;;  %2409 = vmatpush3.bf16.msra.mxu1 %v3326_v48 }
 0x557   :  { %1510 = vmatprep.subr.bf16.mxu0 %v3339_v51  ;;  %2410 = vmatprep.subr.bf16.mxu1 %v3345_v40 }
 0x55a   :  { %1511 = vmatpush1.bf16.msra.mxu0 %v3351_v54  ;;  %2411 = vmatpush3.bf16.msra.mxu1 %v3345_v40 }
 0x55b   :  { %1512 = vmatprep.subr.bf16.mxu0 %v3358_v59  ;;  %2412 = vmatprep.subr.bf16.mxu1 %v3364_v3 }
 0x55e   :  { %1513 = vmatpush1.bf16.msra.mxu0 %v3370_v4  ;;  %2413 = vmatpush3.bf16.msra.mxu1 %v3364_v3 }
 0x55f   :  { %1514 = vmatprep.subr.bf16.mxu0 %v3377_v5  ;;  %2414 = vmatprep.subr.bf16.mxu1 %v3383_v6 }
 0x562   :  { %1515 = vmatpush1.bf16.msra.mxu0 %v3389_v7  ;;  %2415 = vmatpush3.bf16.msra.mxu1 %v3383_v6 }
 0x563   :  { %2416 = vmatprep.subr.bf16.mxu1 %v3396_v0  ;;  %1713 = vmatprep.subr.bf16.mxu0 %v3402_v8  ;;  %v1274_v8 = vunpack.c.h.bf16 %v2137_v11 }
 0x566   :  { %2417 = vmatpush3.bf16.msra.mxu1 %v3396_v0 }
 0x567   :  { %2418 = vmatprep.subr.bf16.mxu1 %v3409_v10 }
 0x56a   :  { %2419 = vmatpush3.bf16.msra.mxu1 %v3409_v10 }
 0x56b   :  { %2424 = vmatprep.subr.bf16.mxu1 %v3294_v42 }
 0x618   :  { %v1321_v32 = vpop.f32.mrb[40].mxu0 }
 0x619   :  { %v1389_v12 = vadd.f32 %v1321_v32, %v1273_v16  ;;  %v1323_v17 = vpop.f32.mrb[41].mxu0 }
 0x61a   :  { %v1325_v18 = vpop.f32.mrb[42].mxu0  ;;  %v1417_v23 = vadd.f32 %v1323_v17, %v1274_v8 }
 0x61b   :  { %v2145_v20 = vmul.f32 -1.442695, %v1389_v12  ;;  %v1390_v21 = vadd.f32 %v1325_v18, %v1276_v30  ;;  %v1327_v22 = vpop.f32.mrb[43].mxu0 }
 0x61c   :  { %v1418_v26 = vadd.f32 %v1327_v22, %v1277_v55  ;;  %v2149_v53 = vmul.f32 -1.442695, %v1417_v23  ;;  %v2142_v22 = vld [vmem:[%s3737_s0 + $0xf8] ss:$24 sps:$4 sm:$0xff]  }
 0x61d   :  { %2706 = vpow2.f32 %v2145_v20  ;;  %v2146_v24 = vmul.f32 -1.442695, %v1390_v21 }
 0x61e   :  { %v2150_v31 = vmul.f32 -1.442695, %v1418_v26 }
 0x61f   :  { %2708 = vpow2.f32 %v2146_v24 }
 0x620   :  { %v1331_v60 = vpop.f32.mrb[44].mxu0  ;;  %v2402_v62 = vpop.f32.mrb[20].mxu1  ;;  %2710 = vpow2.f32 %v2149_v53 }
 0x621   :  { %v1391_v28 = vadd.f32 %v1331_v60, %v1279_v27  ;;  %v1333_v47 = vpop.f32.mrb[45].mxu0  ;;  %v1374_v63 = vpop.f32.mrb[21].mxu1  ;;  %v2144_v27 = vld [vmem:[%s3737_s0 + $0x104] ss:$24 sps:$4 sm:$0xff]  }
 0x622   :  { %v1335_v33 = vpop.f32.mrb[46].mxu0  ;;  %v2403_v34 = vpop.f32.mrb[22].mxu1  ;;  %v1419_v61 = vadd.f32 %v1333_v47, %v1280_v25  ;;  %v1275_v25 = vunpack.c.l.bf16 %v2142_v22  ;;  %v1278_v47 = vunpack.c.l.bf16 %v2144_v27 }
 0x623   :  { %v2147_v58 = vmul.f32 -1.442695, %v1391_v28  ;;  %v1392_v13 = vadd.f32 %v1335_v33, %v1282_v44  ;;  %v1337_v15 = vpop.f32.mrb[47].mxu0  ;;  %v1377_v11 = vpop.f32.mrb[23].mxu1  ;;  %v1445_v44 = vadd.f32 %v3437_v29, %v1374_v63 }
 0x624   :  { %v1420_v16 = vadd.f32 %v1337_v15, %v1283_v57  ;;  %v2151_v32 = vmul.f32 -1.442695, %v1419_v61 }
 0x625   :  { %2712 = vpow2.f32 %v2147_v58  ;;  %v2148_v9 = vmul.f32 -1.442695, %v1392_v13 }
 0x626   :  { %2714 = vpow2.f32 %v2150_v31  ;;  %v2152_v18 = vmul.f32 -1.442695, %v1420_v16  ;;  %v1446_v31 = vadd.f32 %v3437_v29, %v1377_v11  ;;  %v1447_v16 = vadd.f32 %v3437_v29, %v2402_v62 }
 0x627   :  { %v2707_v30 = vpop.eup %2706  ;;  %2716 = vpow2.f32 %v2148_v9  ;;  %v1281_v9 = vunpack.c.h.bf16 %v2142_v22 }
 0x628   :  { %v1405_v8 = vadd.f32 1.0, %v2707_v30 }
 0x629   :  { %v2709_v12 = vpop.eup %2708 }
 0x62a   :  { %2718 = vrcp.f32 %v1405_v8  ;;  %v1406_v17 = vadd.f32 1.0, %v2709_v12  ;;  %v2711_v55 = vpop.eup %2710  ;;  %v1284_v8 = vunpack.c.h.bf16 %v2144_v27  ;;  %v1448_v12 = vadd.f32 %v3437_v29, %v2403_v34 }
 0x62b   :  { %2720 = vpow2.f32 %v2151_v32  ;;  %v1433_v52 = vadd.f32 1.0, %v2711_v55 }
 0x62c   :  { %2722 = vrcp.f32 %v1406_v17 }
 0x62d   :  { %2724 = vpow2.f32 %v2152_v18 }
 0x62f   :  { %v2713_v19 = vpop.eup %2712 }
 0x630   :  { %v2715_v20 = vpop.eup %2714  ;;  %v1407_v21 = vadd.f32 1.0, %v2713_v19 }
 0x631   :  { %v2717_v23 = vpop.eup %2716  ;;  %v1434_v26 = vadd.f32 1.0, %v2715_v20 }
 0x632   :  { %2726 = vrcp.f32 %v1407_v21  ;;  %v1408_v24 = vadd.f32 1.0, %v2717_v23 }
 0x634   :  { %v2719_v53 = vpop.eup %2718  ;;  %2728 = vrcp.f32 %v1408_v24 }
 0x635   :  { %v2721_v60 = vpop.eup %2720  ;;  %2730 = vrcp.f32 %v1433_v52  ;;  %v1449_v28 = vmul.f32 %v2719_v53, %v1445_v44 }
 0x636   :  { %v2723_v33 = vpop.eup %2722  ;;  %2732 = vrcp.f32 %v1434_v26  ;;  %v1435_v13 = vadd.f32 1.0, %v2721_v60 }
 0x637   :  { %v1453_v57 = vadd.f32 %v1449_v28, %v1275_v25  ;;  %v1450_v58 = vmul.f32 %v2723_v33, %v1446_v31  ;;  %v2725_v61 = vpop.eup %2724 }
 0x638   :  { %v1436_v63 = vadd.f32 1.0, %v2725_v61 }
 0x639   :  { %2734 = vtanh.f32 %v1453_v57  ;;  %v1454_v15 = vadd.f32 %v1450_v58, %v1278_v47 }
 0x63b   :  { %2736 = vtanh.f32 %v1454_v15 }
 0x63c   :  { %v2727_v30 = vpop.eup %2726  ;;  %2738 = vrcp.f32 %v1435_v13 }
 0x63d   :  { %v1451_v32 = vmul.f32 %v2727_v30, %v1447_v16  ;;  %2740 = vrcp.f32 %v1436_v63 }
 0x63e   :  { %v2729_v11 = vpop.eup %2728 }
 0x63f   :  { %v2731_v17 = vpop.eup %2730  ;;  %v1455_v18 = vadd.f32 %v1451_v32, %v1281_v9  ;;  %v1452_v55 = vmul.f32 %v2729_v11, %v1448_v12 }
 0x640   :  { %v2733_v19 = vpop.eup %2732  ;;  %v1461_v21 = vsub.f32 1.0, %v2731_v17  ;;  %v1469_v62 = vmul.f32 %v2731_v17, %v3515_v41 }
 0x641   :  { %2742 = vtanh.f32 %v1455_v18  ;;  %v1456_v20 = vadd.f32 %v1452_v55, %v1284_v8  ;;  %v1462_v23 = vsub.f32 1.0, %v2733_v19  ;;  %v1470_v27 = vmul.f32 %v2733_v19, %v3517_v2 }
 0x643   :  { %v2735_v22 = vpop.eup %2734  ;;  %2744 = vtanh.f32 %v1456_v20 }
 0x644   :  { %v1465_v52 = vmul.f32 %v2735_v22, %v1461_v21 }
 0x645   :  { %v2737_v24 = vpop.eup %2736 }
 0x646   :  { %v1466_v26 = vmul.f32 %v2737_v24, %v1462_v23  ;;  %v3587_v34 = vadd.f32 %v1469_v62, %v1465_v52  ;;  %v2739_v25 = vpop.eup %2738 }
 0x647   :  { %v2741_v53 = vpop.eup %2740  ;;  %v1463_v28 = vsub.f32 1.0, %v2739_v25  ;;  %v1471_v33 = vmul.f32 %v2739_v25, %v3525_v49 }
 0x648   :  { %v3589_v44 = vadd.f32 %v1470_v27, %v1466_v26  ;;  %v1464_v41 = vsub.f32 1.0, %v2741_v53  ;;  %v1472_v58 = vmul.f32 %v2741_v53, %v3528_v14 }
 0x64a   :  { %v1498_v60 = vpack.c.bf16 %v3589_v44, %v3587_v34 }
 0x64b   :  { %v2743_v47 = vpop.eup %2742 }
 0x64c   :  { %1533 = vmatmul.mubr.bf16.vlgmr.msra.gmra.mrb[48].mxu0 %v1498_v60  ;;  %2420 = vmatprep.mubr.bf16.mxu1 %v1498_v60  ;;  %v1467_v31 = vmul.f32 %v2743_v47, %v1463_v28  ;;  %v2158_v60 = vld [vmem:[%s3737_s0 + $0x128] ss:$24 sps:$4 sm:$0xff]  }
 0x64d   :  { %v2745_v57 = vpop.eup %2744  ;;  %1542 = vmatprep.mubr.bf16.mxu0 %v2852_v1  ;;  %1714 = vmatpush1.bf16.msra.mxu0 %v3257_v56  ;;  %v2153_v56 = vld [vmem:[%s3737_s0 + $0x120] sm:$0xff] }
 0x64e   :  { %v1468_v2 = vmul.f32 %v2745_v57, %v1464_v41  ;;  %v3597_v61 = vadd.f32 %v1471_v33, %v1467_v31  ;;  %1715 = vmatprep.subr.bf16.mxu0 %v3266_v36  ;;  %v2155_v36 = vld [vmem:[%s3737_s0 + $0x12c] sm:$0xff]  ;;  %v1488_v57 = vunpack.c.l.bf16 %v2158_v60 }
 0x64f   :  { %v2160_v31 = vld [vmem:[%s3737_s0 + $0x134] ss:$24 sps:$4 sm:$0xff]  }
 0x650   :  { %v3600_v13 = vadd.f32 %v1472_v58, %v1468_v2 }
 0x651   :  { %1716 = vmatpush1.bf16.msra.mxu0 %v3274_v35  ;;  %v1486_v35 = vunpack.c.l.bf16 %v2153_v56 }
 0x652   :  { %v1499_v15 = vpack.c.bf16 %v3600_v13, %v3597_v61  ;;  %1717 = vmatprep.subr.bf16.mxu0 %v3282_v37  ;;  %v1489_v37 = vunpack.c.l.bf16 %v2155_v36 }
 0x654   :  { %1543 = vmatmul.mubr.bf16.gmra.mrb[52].mxu0 %v1499_v15  ;;  %2421 = vmatmul.mubr.bf16.vlgmr.msra.gmra.mrb[24].mxu1 %v1499_v15 }
 0x655   :  { %1718 = vmatpush1.bf16.msra.mxu0 %v3288_v38  ;;  %2425 = vmatpush3.bf16.msra.mxu1 %v3294_v42  ;;  %v1487_v42 = vunpack.c.h.bf16 %v2153_v56 }
 0x656   :  { %1719 = vmatprep.subr.bf16.mxu0 %v3300_v43  ;;  %2426 = vmatprep.subr.bf16.mxu1 %v3306_v45 }
 0x657   :  { %1745 = vmatprep.mubr.bf16.mxu0 %v2852_v1 }
 0x659   :  { %1720 = vmatpush1.bf16.msra.mxu0 %v3313_v46  ;;  %2427 = vmatpush3.bf16.msra.mxu1 %v3306_v45 }
 0x65a   :  { %1721 = vmatprep.subr.bf16.mxu0 %v3320_v39  ;;  %2428 = vmatprep.subr.bf16.mxu1 %v3326_v48  ;;  %v1490_v39 = vunpack.c.h.bf16 %v2155_v36  ;;  %v1491_v36 = vunpack.c.l.bf16 %v2160_v31 }
 0x65d   :  { %1722 = vmatpush1.bf16.msra.mxu0 %v3332_v50  ;;  %2429 = vmatpush3.bf16.msra.mxu1 %v3326_v48  ;;  %v2157_v48 = vld [vmem:[%s3737_s0 + $0x138] sm:$0xff] }
 0x65e   :  { %1723 = vmatprep.subr.bf16.mxu0 %v3339_v51  ;;  %2430 = vmatprep.subr.bf16.mxu1 %v3345_v40 }
 0x661   :  { %1724 = vmatpush1.bf16.msra.mxu0 %v3351_v54  ;;  %2431 = vmatpush3.bf16.msra.mxu1 %v3345_v40 }
 0x662   :  { %1725 = vmatprep.subr.bf16.mxu0 %v3358_v59  ;;  %2432 = vmatprep.subr.bf16.mxu1 %v3364_v3  ;;  %v2159_v59 = vld [vmem:[%s3737_s0 + $0x144] sm:$0xff] }
 0x663   :  { %v1496_v8 = vunpack.c.h.bf16 %v2159_v59 }
 0x665   :  { %1726 = vmatpush1.bf16.msra.mxu0 %v3370_v4  ;;  %2433 = vmatpush3.bf16.msra.mxu1 %v3364_v3  ;;  %v1492_v4 = vunpack.c.l.bf16 %v2157_v48 }
 0x666   :  { %1727 = vmatprep.subr.bf16.mxu0 %v3377_v5  ;;  %2434 = vmatprep.subr.bf16.mxu1 %v3383_v6 }
 0x669   :  { %1728 = vmatpush1.bf16.msra.mxu0 %v3389_v7  ;;  %2435 = vmatpush3.bf16.msra.mxu1 %v3383_v6  ;;  %v1493_v6 = vunpack.c.h.bf16 %v2157_v48  ;;  %v1495_v7 = vunpack.c.l.bf16 %v2159_v59 }
 0x66a   :  { %2436 = vmatprep.subr.bf16.mxu1 %v3396_v0 }
 0x66d   :  { %2437 = vmatpush3.bf16.msra.mxu1 %v3396_v0 }
 0x66e   :  { %2438 = vmatprep.subr.bf16.mxu1 %v3409_v10 }
 0x671   :  { %2439 = vmatpush3.bf16.msra.mxu1 %v3409_v10 }
 0x71f   :  { %v1534_v38 = vpop.f32.mrb[48].mxu0 }
 0x720   :  { %v1602_v43 = vadd.f32 %v1534_v38, %v1486_v35  ;;  %v1536_v45 = vpop.f32.mrb[49].mxu0 }
 0x721   :  { %v1538_v46 = vpop.f32.mrb[50].mxu0  ;;  %v1630_v54 = vadd.f32 %v1536_v45, %v1487_v42 }
 0x722   :  { %v2161_v50 = vmul.f32 -1.442695, %v1602_v43  ;;  %v1603_v51 = vadd.f32 %v1538_v46, %v1489_v37  ;;  %v1540_v40 = vpop.f32.mrb[51].mxu0 }
 0x723   :  { %v1631_v5 = vadd.f32 %v1540_v40, %v1490_v39  ;;  %v2165_v0 = vmul.f32 -1.442695, %v1630_v54  ;;  %v1494_v39 = vunpack.c.h.bf16 %v2158_v60  ;;  %v1497_v54 = vunpack.c.h.bf16 %v2160_v31  ;;  %v2169_v60 = vld [vmem:[%s3737_s0 + $0x150] sm:$0xff] }
 0x724   :  { %2746 = vpow2.f32 %v2161_v50  ;;  %v2162_v3 = vmul.f32 -1.442695, %v1603_v51 }
 0x725   :  { %v2166_v63 = vmul.f32 -1.442695, %v1631_v5 }
 0x726   :  { %2748 = vpow2.f32 %v2162_v3 }
 0x727   :  { %v1544_v10 = vpop.f32.mrb[52].mxu0  ;;  %v2422_v49 = vpop.f32.mrb[24].mxu1  ;;  %2750 = vpow2.f32 %v2165_v0 }
 0x728   :  { %v1604_v14 = vadd.f32 %v1544_v10, %v1492_v4  ;;  %v1546_v9 = vpop.f32.mrb[53].mxu0  ;;  %v1587_v16 = vpop.f32.mrb[25].mxu1  ;;  %v1660_v48 = vadd.f32 %v3437_v29, %v2422_v49 }
 0x729   :  { %v1548_v30 = vpop.f32.mrb[54].mxu0  ;;  %v2423_v32 = vpop.f32.mrb[26].mxu1  ;;  %v1632_v11 = vadd.f32 %v1546_v9, %v1493_v6  ;;  %v1658_v2 = vadd.f32 %v3437_v29, %v1587_v16 }
 0x72a   :  { %v2163_v12 = vmul.f32 -1.442695, %v1604_v14  ;;  %v1605_v17 = vadd.f32 %v1548_v30, %v1495_v7  ;;  %v1550_v18 = vpop.f32.mrb[55].mxu0  ;;  %v1590_v55 = vpop.f32.mrb[27].mxu1  ;;  %v1661_v59 = vadd.f32 %v3437_v29, %v2423_v32 }
 0x72b   :  { %v1633_v20 = vadd.f32 %v1550_v18, %v1496_v8  ;;  %v2167_v22 = vmul.f32 -1.442695, %v1632_v11  ;;  %v1659_v35 = vadd.f32 %v3437_v29, %v1590_v55 }
 0x72c   :  { %2752 = vpow2.f32 %v2163_v12  ;;  %v2164_v19 = vmul.f32 -1.442695, %v1605_v17 }
 0x72d   :  { %2754 = vpow2.f32 %v2166_v63  ;;  %v2168_v24 = vmul.f32 -1.442695, %v1633_v20 }
 0x72e   :  { %v2747_v21 = vpop.eup %2746  ;;  %2756 = vpow2.f32 %v2164_v19 }
 0x72f   :  { %v1618_v62 = vadd.f32 1.0, %v2747_v21 }
 0x730   :  { %v2749_v23 = vpop.eup %2748 }
 0x731   :  { %2758 = vrcp.f32 %v1618_v62  ;;  %v1619_v52 = vadd.f32 1.0, %v2749_v23  ;;  %v2751_v27 = vpop.eup %2750 }
 0x732   :  { %2760 = vpow2.f32 %v2167_v22  ;;  %v1646_v47 = vadd.f32 1.0, %v2751_v27  ;;  %v2502_v27 = vld [vmem:[%s3739_s3 + $0x20] sm:$0xff]  }
 0x733   :  { %2762 = vrcp.f32 %v1619_v52 }
 0x734   :  { %2764 = vpow2.f32 %v2168_v24  ;;  %v2498_v24 = vld [vmem:[%s3739_s3] sm:$0xff]  }
 0x735   :  { %2444 = vmatprep.subr.bf16.mxu0 %v2498_v24 }
 0x736   :  { %v2753_v26 = vpop.eup %2752 }
 0x737   :  { %v2755_v25 = vpop.eup %2754  ;;  %v1620_v53 = vadd.f32 1.0, %v2753_v26  ;;  %v2503_v26 = vld [vmem:[%s3739_s3 + $0x28] sm:$0xff]  }
 0x738   :  { %v2757_v28 = vpop.eup %2756  ;;  %v1647_v33 = vadd.f32 1.0, %v2755_v25  ;;  %v2504_v25 = vld [vmem:[%s3739_s3 + $0x30] sm:$0xff]  }
 0x739   :  { %2766 = vrcp.f32 %v1620_v53  ;;  %v1621_v41 = vadd.f32 1.0, %v2757_v28  ;;  %v2505_v53 = vld [vmem:[%s3739_s3 + $0x38] sm:$0xff]  }
 0x73a   :  { %v2171_v28 = vld [vmem:[%s3737_s0 + $0x15c] sm:$0xff] }
 0x73b   :  { %v2759_v58 = vpop.eup %2758  ;;  %2768 = vrcp.f32 %v1621_v41  ;;  %v1702_v41 = vunpack.c.l.bf16 %v2171_v28 }
 0x73c   :  { %v2761_v15 = vpop.eup %2760  ;;  %2770 = vrcp.f32 %v1646_v47  ;;  %v1662_v56 = vmul.f32 %v2759_v58, %v1658_v2  ;;  %v1699_v47 = vunpack.c.l.bf16 %v2169_v60 }
 0x73d   :  { %v2763_v37 = vpop.eup %2762  ;;  %2772 = vrcp.f32 %v1647_v33  ;;  %v1648_v45 = vadd.f32 1.0, %v2761_v15  ;;  %v1700_v33 = vunpack.c.h.bf16 %v2169_v60  ;;  %v1703_v15 = vunpack.c.h.bf16 %v2171_v28 }
 0x73e   :  { %v1666_v38 = vadd.f32 %v1662_v56, %v1488_v57  ;;  %v1663_v42 = vmul.f32 %v2763_v37, %v1659_v35  ;;  %v2765_v43 = vpop.eup %2764  ;;  %v2173_v56 = vld [vmem:[%s3737_s0 + $0x168] sm:$0xff] }
 0x73f   :  { %v1649_v50 = vadd.f32 1.0, %v2765_v43 }
 0x740   :  { %2774 = vtanh.f32 %v1666_v38  ;;  %v1667_v46 = vadd.f32 %v1663_v42, %v1491_v36  ;;  %v2175_v42 = vld [vmem:[%s3737_s0 + $0x174] sm:$0xff] }
 0x742   :  { %2776 = vtanh.f32 %v1667_v46 }
 0x743   :  { %v2767_v51 = vpop.eup %2766  ;;  %2778 = vrcp.f32 %v1648_v45  ;;  %v1705_v45 = vunpack.c.l.bf16 %v2173_v56 }
 0x744   :  { %v1664_v40 = vmul.f32 %v2767_v51, %v1660_v48  ;;  %2780 = vrcp.f32 %v1649_v50  ;;  %v1708_v48 = vunpack.c.l.bf16 %v2175_v42 }
 0x745   :  { %v2769_v3 = vpop.eup %2768 }
 0x746   :  { %v2771_v4 = vpop.eup %2770  ;;  %v1668_v5 = vadd.f32 %v1664_v40, %v1494_v39  ;;  %v1665_v6 = vmul.f32 %v2769_v3, %v1661_v59  ;;  %v1706_v39 = vunpack.c.h.bf16 %v2173_v56 }
 0x747   :  { %v2773_v7 = vpop.eup %2772  ;;  %v1674_v10 = vsub.f32 1.0, %v2771_v4  ;;  %v1682_v49 = vmul.f32 %v2771_v4, %v3587_v34 }
 0x748   :  { %2782 = vtanh.f32 %v1668_v5  ;;  %v1669_v0 = vadd.f32 %v1665_v6, %v1497_v54  ;;  %v1675_v9 = vsub.f32 1.0, %v2773_v7  ;;  %v1683_v30 = vmul.f32 %v2773_v7, %v3589_v44 }
 0x749   :  { %v1709_v7 = vunpack.c.h.bf16 %v2175_v42 }
 0x74a   :  { %v2775_v14 = vpop.eup %2774  ;;  %2784 = vtanh.f32 %v1669_v0 }
 0x74b   :  { %v1678_v16 = vmul.f32 %v2775_v14, %v1674_v10 }
 0x74c   :  { %v2777_v63 = vpop.eup %2776 }
 0x74d   :  { %v1679_v8 = vmul.f32 %v2777_v63, %v1675_v9  ;;  %v3657_v29 = vadd.f32 %v1682_v49, %v1678_v16  ;;  %v2779_v32 = vpop.eup %2778 }
 0x74e   :  { %v2781_v11 = vpop.eup %2780  ;;  %v1676_v18 = vsub.f32 1.0, %v2779_v32  ;;  %v1684_v20 = vmul.f32 %v2779_v32, %v3597_v61  ;;  %v2500_v61 = vld [vmem:[%s3739_s3 + $0x10] sm:$0xff]  }
 0x74f   :  { %v3659_v12 = vadd.f32 %v1683_v30, %v1679_v8  ;;  %v1677_v34 = vsub.f32 1.0, %v2781_v11  ;;  %v1685_v22 = vmul.f32 %v2781_v11, %v3600_v13  ;;  %v2501_v13 = vld [vmem:[%s3739_s3 + $0x18] sm:$0xff]  }
 0x751   :  { %v1711_v17 = vpack.c.bf16 %v3659_v12, %v3657_v29 }
 0x752   :  { %v2783_v55 = vpop.eup %2782 }
 0x753   :  { %1746 = vmatmul.mubr.bf16.vlgmr.msra.gmra.mrb[56].mxu0 %v1711_v17  ;;  %2440 = vmatprep.mubr.bf16.mxu1 %v1711_v17  ;;  %v1680_v19 = vmul.f32 %v2783_v55, %v1676_v18 }
 0x754   :  { %v2785_v21 = vpop.eup %2784  ;;  %1755 = vmatprep.mubr.bf16.mxu0 %v2852_v1  ;;  %2445 = vmatpush3.bf16.msra.mxu0 %v2498_v24  ;;  %v2499_v1 = vld [vmem:[%s3739_s3 + $0x8] sm:$0xff]   ;;  %v2176_v24 = vld [vmem:[%s3737_s0 + $0x164] ss:$24 sps:$4 sm:$0xff]  }
 0x755   :  { %v1681_v44 = vmul.f32 %v2785_v21, %v1677_v34  ;;  %v3666_v62 = vadd.f32 %v1684_v20, %v1680_v19  ;;  %2446 = vmatprep.subr.bf16.mxu0 %v2499_v1  ;;  %v2174_v21 = vld [vmem:[%s3737_s0 + $0x158] ss:$24 sps:$4 sm:$0xff]   ;;  %v1704_v60 = vunpack.c.l.bf16 %v2176_v24 }
 0x757   :  { %v3668_v23 = vadd.f32 %v1685_v22, %v1681_v44 }
 0x758   :  { %2447 = vmatpush3.bf16.msra.mxu0 %v2499_v1 }
 0x759   :  { %v1712_v52 = vpack.c.bf16 %v3668_v23, %v3666_v62  ;;  %2448 = vmatprep.subr.bf16.mxu0 %v2500_v61 }
 0x75b   :  { %1756 = vmatmul.mubr.bf16.gmra.mrb[60].mxu0 %v1712_v52  ;;  %2441 = vmatmul.mubr.bf16.vlgmr.msra.gmra.mrb[28].mxu1 %v1712_v52 }
 0x75c   :  { %2449 = vmatpush3.bf16.msra.mxu0 %v2500_v61  ;;  %v1701_v61 = vunpack.c.l.bf16 %v2174_v21 }
 0x75d   :  { %2450 = vmatprep.subr.bf16.mxu0 %v2501_v13 }
 0x760   :  { %2451 = vmatpush3.bf16.msra.mxu0 %v2501_v13  ;;  %v2851_v13 = vld [vmem:[%s3738_s2] ss:$0 sm:$0xff] }
 0x761   :  { %2452 = vmatprep.subr.bf16.mxu0 %v2502_v27 }
 0x764   :  { %2453 = vmatpush3.bf16.msra.mxu0 %v2502_v27 }
 0x765   :  { %2454 = vmatprep.subr.bf16.mxu0 %v2503_v26 }
 0x768   :  { %2455 = vmatpush3.bf16.msra.mxu0 %v2503_v26 }
 0x769   :  { %2456 = vmatprep.subr.bf16.mxu0 %v2504_v25 }
 0x76c   :  { %2457 = vmatpush3.bf16.msra.mxu0 %v2504_v25 }
 0x76d   :  { %2458 = vmatprep.subr.bf16.mxu0 %v2505_v53 }
 0x770   :  { %2459 = vmatpush3.bf16.msra.mxu0 %v2505_v53 }
 0x826   :  { %v1747_v31 = vpop.f32.mrb[56].mxu0 }
 0x827   :  { %v1815_v57 = vadd.f32 %v1747_v31, %v1699_v47  ;;  %v1749_v2 = vpop.f32.mrb[57].mxu0 }
 0x828   :  { %v1751_v58 = vpop.f32.mrb[58].mxu0  ;;  %v1843_v38 = vadd.f32 %v1749_v2, %v1700_v33 }
 0x829   :  { %v2177_v36 = vmul.f32 -1.442695, %v1815_v57  ;;  %v1816_v35 = vadd.f32 %v1751_v58, %v1702_v41  ;;  %v1753_v37 = vpop.f32.mrb[59].mxu0  ;;  %v1707_v58 = vunpack.c.h.bf16 %v2174_v21 }
 0x82a   :  { %v1844_v46 = vadd.f32 %v1753_v37, %v1703_v15  ;;  %v2181_v50 = vmul.f32 -1.442695, %v1843_v38  ;;  %v1710_v37 = vunpack.c.h.bf16 %v2176_v24 }
 0x82b   :  { %2786 = vpow2.f32 %v2177_v36  ;;  %v2178_v43 = vmul.f32 -1.442695, %v1816_v35 }
 0x82c   :  { %v2182_v4 = vmul.f32 -1.442695, %v1844_v46 }
 0x82d   :  { %2788 = vpow2.f32 %v2178_v43 }
 0x82e   :  { %v1757_v51 = vpop.f32.mrb[60].mxu0  ;;  %v2442_v40 = vpop.f32.mrb[28].mxu1  ;;  %2790 = vpow2.f32 %v2181_v50 }
 0x82f   :  { %v1817_v54 = vadd.f32 %v1757_v51, %v1705_v45  ;;  %v1759_v59 = vpop.f32.mrb[61].mxu0  ;;  %v1800_v3 = vpop.f32.mrb[29].mxu1  ;;  %v1873_v15 = vadd.f32 %v2851_v13, %v2442_v40 }
 0x830   :  { %v1761_v5 = vpop.f32.mrb[62].mxu0  ;;  %v2443_v6 = vpop.f32.mrb[30].mxu1  ;;  %v1845_v10 = vadd.f32 %v1759_v59, %v1706_v39  ;;  %v1871_v27 = vadd.f32 %v2851_v13, %v1800_v3 }
 0x831   :  { %v2179_v0 = vmul.f32 -1.442695, %v1817_v54  ;;  %v1818_v14 = vadd.f32 %v1761_v5, %v1708_v48  ;;  %v1763_v49 = vpop.f32.mrb[63].mxu0  ;;  %v1803_v9 = vpop.f32.mrb[31].mxu1  ;;  %v1874_v38 = vadd.f32 %v2851_v13, %v2443_v6 }
 0x832   :  { %v1846_v63 = vadd.f32 %v1763_v49, %v1709_v7  ;;  %v2183_v8 = vmul.f32 -1.442695, %v1845_v10  ;;  %v1872_v28 = vadd.f32 %v2851_v13, %v1803_v9 }
 0x833   :  { %2792 = vpow2.f32 %v2179_v0  ;;  %v2180_v16 = vmul.f32 -1.442695, %v1818_v14 }
 0x834   :  { %2794 = vpow2.f32 %v2182_v4  ;;  %v2184_v18 = vmul.f32 -1.442695, %v1846_v63 }
 0x835   :  { %v2787_v30 = vpop.eup %2786  ;;  %2796 = vpow2.f32 %v2180_v16 }
 0x836   :  { %v1831_v32 = vadd.f32 1.0, %v2787_v30 }
 0x837   :  { %v2789_v11 = vpop.eup %2788 }
 0x838   :  { %2798 = vrcp.f32 %v1831_v32  ;;  %v1832_v17 = vadd.f32 1.0, %v2789_v11  ;;  %v2791_v55 = vpop.eup %2790 }
 0x839   :  { %2800 = vpow2.f32 %v2183_v8  ;;  %v1859_v22 = vadd.f32 1.0, %v2791_v55 }
 0x83a   :  { %2802 = vrcp.f32 %v1832_v17 }
 0x83b   :  { %2804 = vpow2.f32 %v2184_v18 }
 0x83d   :  { %v2793_v34 = vpop.eup %2792 }
 0x83e   :  { %v2795_v19 = vpop.eup %2794  ;;  %v1833_v20 = vadd.f32 1.0, %v2793_v34 }
 0x83f   :  { %v2797_v44 = vpop.eup %2796  ;;  %v1860_v1 = vadd.f32 1.0, %v2795_v19 }
 0x840   :  { %2806 = vrcp.f32 %v1833_v20  ;;  %v1834_v52 = vadd.f32 1.0, %v2797_v44 }
 0x842   :  { %v2799_v26 = vpop.eup %2798  ;;  %2808 = vrcp.f32 %v1834_v52 }
 0x843   :  { %v2801_v25 = vpop.eup %2800  ;;  %2810 = vrcp.f32 %v1859_v22  ;;  %v1875_v53 = vmul.f32 %v2799_v26, %v1871_v27 }
 0x844   :  { %v2803_v47 = vpop.eup %2802  ;;  %2812 = vrcp.f32 %v1860_v1  ;;  %v1861_v57 = vadd.f32 1.0, %v2801_v25 }
 0x845   :  { %v1879_v41 = vadd.f32 %v1875_v53, %v1701_v61  ;;  %v1876_v31 = vmul.f32 %v2803_v47, %v1872_v28  ;;  %v2805_v33 = vpop.eup %2804 }
 0x846   :  { %v1862_v56 = vadd.f32 1.0, %v2805_v33 }
 0x847   :  { %2814 = vtanh.f32 %v1879_v41  ;;  %v1880_v2 = vadd.f32 %v1876_v31, %v1704_v60 }
 0x849   :  { %2816 = vtanh.f32 %v1880_v2 }
 0x84a   :  { %v2807_v36 = vpop.eup %2806  ;;  %2818 = vrcp.f32 %v1861_v57 }
 0x84b   :  { %v1877_v35 = vmul.f32 %v2807_v36, %v1873_v15  ;;  %2820 = vrcp.f32 %v1862_v56 }
 0x84c   :  { %v2809_v42 = vpop.eup %2808 }
 0x84d   :  { %v2811_v43 = vpop.eup %2810  ;;  %v1881_v45 = vadd.f32 %v1877_v35, %v1707_v58  ;;  %v1878_v46 = vmul.f32 %v2809_v42, %v1874_v38 }
 0x84e   :  { %v2813_v39 = vpop.eup %2812  ;;  %v1887_v50 = vsub.f32 1.0, %v2811_v43  ;;  %v1895_v59 = vmul.f32 %v2811_v43, %v3657_v29 }
 0x84f   :  { %2822 = vtanh.f32 %v1881_v45  ;;  %v1882_v48 = vadd.f32 %v1878_v46, %v1710_v37  ;;  %v1888_v54 = vsub.f32 1.0, %v2813_v39  ;;  %v1896_v5 = vmul.f32 %v2813_v39, %v3659_v12  ;;  %v2185_v12 = vld [vmem:[%s3740_s4] ss:$0 sm:$0xff] }
 0x851   :  { %v2815_v51 = vpop.eup %2814  ;;  %2824 = vtanh.f32 %v1882_v48 }
 0x852   :  { %v1891_v40 = vmul.f32 %v2815_v51, %v1887_v50 }
 0x853   :  { %v2817_v3 = vpop.eup %2816 }
 0x854   :  { %v1892_v4 = vmul.f32 %v2817_v3, %v1888_v54  ;;  %v1899_v6 = vadd.f32 %v1895_v59, %v1891_v40  ;;  %v2819_v7 = vpop.eup %2818 }
 0x855   :  { %v2821_v10 = vpop.eup %2820  ;;  %v1889_v14 = vsub.f32 1.0, %v2819_v7  ;;  %v1897_v16 = vmul.f32 %v2819_v7, %v3666_v62 }
 0x856   :  { %v1900_v0 = vadd.f32 %v1896_v5, %v1892_v4  ;;  %v1890_v63 = vsub.f32 1.0, %v2821_v10  ;;  %v1898_v32 = vmul.f32 %v2821_v10, %v3668_v23 }
 0x858   :  { %v1910_v49 = vpack.c.bf16 %v1900_v0, %v1899_v6 }
 0x859   :  { %v2823_v9 = vpop.eup %2822 }
 0x85a   :  { %2460 = vmatprep.mubr.bf16.mxu0 %v1910_v49  ;;  %v1893_v30 = vmul.f32 %v2823_v9, %v1889_v14 }
 0x85b   :  { %v2825_v8 = vpop.eup %2824 }
 0x85c   :  { %v1894_v29 = vmul.f32 %v2825_v8, %v1890_v63  ;;  %v1901_v11 = vadd.f32 %v1897_v16, %v1893_v30 }
 0x85e   :  { %v1902_v17 = vadd.f32 %v1898_v32, %v1894_v29 }
 0x860   :  { %v1911_v18 = vpack.c.bf16 %v1902_v17, %v1901_v11 }
 0x862   :  { %2461 = vmatmul.mubr.bf16.vlgmr.msra.gmra.mrb[64].mxu0 %v1911_v18 }
 0x935   :  { %v2462_v55 = vpop.f32.mrb[64].mxu0 }
 0x936   :  { %v2026_v34 = vadd.f32 %v2462_v55, %v2185_v12  ;;  %v2017_v19 = vpop.f32.mrb[65].mxu0 }
 0x937   :  { %v2018_v20 = vadd.f32 %v2185_v12, %v2017_v19  ;;  %v2463_v62 = vpop.f32.mrb[66].mxu0 }
 0x938   :  { %2034 = vst [vmem:[%s3741_s5 + $0x10] sm:$0xff] %v2026_v34  ;;  %v2029_v21 = vadd.f32 %v2463_v62, %v2185_v12  ;;  %v2020_v23 = vpop.f32.mrb[67].mxu0 }
 0x939   :  { %2032 = vst [vmem:[%s3741_s5] sm:$0xff] %v2018_v20  ;;  %v2021_v44 = vadd.f32 %v2185_v12, %v2020_v23 }
 0x93a   :  { %2035 = vst [vmem:[%s3741_s5 + $0x18] sm:$0xff] %v2029_v21 }
 0x93b   :  { %2033 = vst [vmem:[%s3741_s5 + $0x8] sm:$0xff] %v2021_v44 }

</bundles_post_ra>
